<compile_context>
chip_gen: v5e
topology: v5e:2x2
jax: 0.10.0
libtpu: 0.0.40
codegen_flags: <defaults>
</compile_context>

<pallas_src>
import functools

import jax
import jax.numpy as jnp
from jax import lax
from jax.experimental import pallas as pl
from jax.experimental.pallas import tpu as pltpu

NEG_SLOPE = 0.01   # nn.LeakyReLU default negative_slope
BN_EPS = 1e-5      # nn.BatchNorm2d default eps
FPAD = 2           # zero-ring width of the spatial frame (max padding of any conv)

# static per-stage conv configs: (KH, KW, dilation, torch padding)
_CFG1 = (3, 3, 1, 1)
_CFG2 = (3, 3, 2, 2)
_CFG3 = (2, 2, 2, 1)


def _tap_shifts(cfg, Wp):
    """Flattened lane shift of each tap: out[q] reads frame[q + shift_t]."""
    KH, KW, d, p = cfg
    return tuple((kh * d - p) * Wp + (kw * d - p)
                 for kh in range(KH) for kw in range(KW))


def _round_up(x, m):
    return ((x + m - 1) // m) * m


# ----------------------------------------------------------------------------
# Fused Pallas kernel: the whole UpBlock for one batch element.
# ----------------------------------------------------------------------------
def _upblock_kernel(a_ref, s_ref, w1a_ref, w1s_ref, w2_ref, w3_ref, w4_ref,
                    ep1_ref, ep2_ref, ep3_ref, ep4_ref, mask_ref,
                    o_ref, y_scr,
                    *, cout, npad, margin, shifts1, shifts2, shifts3):
    mask = mask_ref[...]                   # (1, npad): 1 inside the image, else 0

    # Zero ONLY the two margin strips of the tap staging buffer; its interior is
    # fully overwritten by every stage's matmul.  Done every grid step on purpose:
    # scratch is per-TensorCore and under the "parallel" megacore split core 1
    # never executes program 0, so hoisting behind program_id()==0 would be wrong.
    strip = jnp.zeros((y_scr.shape[0], margin), jnp.float32)
    y_scr[:, 0:margin] = strip
    y_scr[:, margin + npad:] = strip

    def epilogue(acc, ep_ref):
        # conv bias -> LeakyReLU -> folded eval BatchNorm, all per-channel
        y = acc + ep_ref[0]
        y = jnp.where(y >= 0, y, NEG_SLOPE * y)
        return y * ep_ref[1] + ep_ref[2]

    def stage(y_stacked, ep_ref, shifts):
        # y_stacked: (T*cout, npad) f32 stacked-tap matmul result; tap t's output
        # channels live in rows [t*cout, (t+1)*cout).  Stage it into the margin
        # buffer so each tap is a narrow (cout, npad) lane-shifted window read.
        nrows = y_stacked.shape[0]
        y_scr[0:nrows, margin:margin + npad] = y_stacked
        lo = margin + shifts[0]
        acc = y_scr[0:cout, lo:lo + npad]
        for t in range(1, len(shifts)):
            lo = margin + shifts[t]
            acc = acc + y_scr[t * cout:(t + 1) * cout, lo:lo + npad]
        return epilogue(acc, ep_ref)

    # conv1 (3x3, d=1, p=1): the channel concat(upA, skip) is fused by splitting
    # the stacked LHS; each input frame streams through the MXU exactly once.
    y1 = (jnp.dot(w1a_ref[...], a_ref[0], preferred_element_type=jnp.float32)
          + jnp.dot(w1s_ref[...], s_ref[0], preferred_element_type=jnp.float32))
    e1 = stage(y1, ep1_ref, shifts1) * mask          # ring/tail must be exact zeros
    # conv2 (3x3, d=2, p=2)
    y2 = jnp.dot(w2_ref[...], e1.astype(jnp.bfloat16),
                 preferred_element_type=jnp.float32)
    e2 = stage(y2, ep2_ref, shifts2) * mask
    # conv3 (2x2, d=2, p=1) -- ring left unmasked: conv4 is 1x1 and the wrapper crops
    y3 = jnp.dot(w3_ref[...], e2.astype(jnp.bfloat16),
                 preferred_element_type=jnp.float32)
    e3 = stage(y3, ep3_ref, shifts3)
    # conv4 (1x1) over concat(e1, e2, e3) folded into three small matmuls
    acc4 = (jnp.dot(w4_ref[0], e1.astype(jnp.bfloat16), preferred_element_type=jnp.float32)
            + jnp.dot(w4_ref[1], e2.astype(jnp.bfloat16), preferred_element_type=jnp.float32)
            + jnp.dot(w4_ref[2], e3.astype(jnp.bfloat16), preferred_element_type=jnp.float32))
    o_ref[0] = epilogue(acc4, ep4_ref).astype(o_ref.dtype)


# ----------------------------------------------------------------------------
# Wrapper: parameter repacking + single pallas_call (NCHW in / NCHW out)
# ----------------------------------------------------------------------------
def _stack_taps(w_hwio):
    # (KH, KW, Cin, Cout) -> (KH*KW*Cout, Cin); row t*Cout + co holds W[kh,kw,:,co]
    KH, KW, Cin, Cout = w_hwio.shape
    w = jnp.transpose(w_hwio.reshape(KH * KW, Cin, Cout), (0, 2, 1))
    return w.reshape(KH * KW * Cout, Cin)


def _epilogue_params(bias, gamma, beta, rmean, rvar):
    scale = gamma / jnp.sqrt(rvar + BN_EPS)
    shift = beta - rmean * scale
    return jnp.stack([bias, scale, shift], axis=0)[:, :, None]    # (3, C, 1) f32


def pixelshuffle_nchw(x, pH, pW):
    B, iC, iH, iW = x.shape
    oC = iC // (pH * pW)
    y = x.reshape(B, oC, pH, pW, iH, iW)
    y = jnp.transpose(y, (0, 1, 4, 2, 5, 3))
    return y.reshape(B, oC, iH * pH, iW * pW)


def _frame_slab(x_nchw, c_pad, npad):
    # (B, C, H, W) -> (B, c_pad, npad) bf16: FPAD zero ring, zero channel pad and
    # zero lane tail; the flattened (Hp*Wp) spatial grid rides the 128-lane axis.
    B, C, H, W = x_nchw.shape
    xp = jnp.pad(x_nchw, ((0, 0), (0, c_pad - C), (FPAD, FPAD), (FPAD, FPAD)))
    xf = xp.reshape(B, c_pad, (H + 2 * FPAD) * (W + 2 * FPAD))
    xf = jnp.pad(xf, ((0, 0), (0, 0), (0, npad - xf.shape[-1])))
    return xf.astype(jnp.bfloat16)


@jax.jit
def upblock_forward(params, x_nchw, skip_nchw):
    p = params
    upA = pixelshuffle_nchw(x_nchw, 2, 4)             # dropout1/2/3: identity (eval)
    B, Ca, H, W = upA.shape
    Cs = skip_nchw.shape[1]
    Cout = p["conv1"][0].shape[-1]
    Hp, Wp = H + 2 * FPAD, W + 2 * FPAD
    N = Hp * Wp
    Np = _round_up(N, 128)                            # lane-dense slabs / stores
    Ca_p = _round_up(Ca, 8)
    Cs_p = _round_up(Cs, 8)

    # Concat fusion: upA and skip stay separate HBM arrays; the kernel consumes
    # them via two stacked-LHS matmuls (no upB / concat materialization).
    a_fr = _frame_slab(upA, Ca_p, Np)
    s_fr = _frame_slab(skip_nchw, Cs_p, Np)

    w1 = p["conv1"][0]                                # (3, 3, Ca+Cs, Cout)
    pad_a = ((0, 0), (0, 0), (0, Ca_p - Ca), (0, 0))
    pad_s = ((0, 0), (0, 0), (0, Cs_p - Cs), (0, 0))
    w1a = _stack_taps(jnp.pad(w1[:, :, :Ca, :], pad_a)).astype(jnp.bfloat16)
    w1s = _stack_taps(jnp.pad(w1[:, :, Ca:, :], pad_s)).astype(jnp.bfloat16)
    w2 = _stack_taps(p["conv2"][0]).astype(jnp.bfloat16)
    w3 = _stack_taps(p["conv3"][0]).astype(jnp.bfloat16)
    # 1x1 conv over concat(e1,e2,e3): split into three (Cout, Cout) matrices
    w4 = jnp.transpose(p["conv4"][0][0, 0]).reshape(Cout, 3, Cout)
    w4 = jnp.transpose(w4, (1, 0, 2)).astype(jnp.bfloat16)

    ep1 = _epilogue_params(p["conv1"][1], *p["bn1"])
    ep2 = _epilogue_params(p["conv2"][1], *p["bn2"])
    ep3 = _epilogue_params(p["conv3"][1], *p["bn3"])
    ep4 = _epilogue_params(p["conv4"][1], *p["bn4"])

    mask = jnp.pad(jnp.ones((H, W), jnp.float32),
                   ((FPAD, FPAD), (FPAD, FPAD))).reshape(1, N)
    mask = jnp.pad(mask, ((0, 0), (0, Np - N)))

    shifts1 = _tap_shifts(_CFG1, Wp)
    shifts2 = _tap_shifts(_CFG2, Wp)
    shifts3 = _tap_shifts(_CFG3, Wp)
    margin = _round_up(max(abs(s) for sh in (shifts1, shifts2, shifts3) for s in sh),
                       128)
    y_rows = max(len(shifts1), len(shifts2), len(shifts3)) * Cout

    kernel = functools.partial(
        _upblock_kernel, cout=Cout, npad=Np, margin=margin,
        shifts1=shifts1, shifts2=shifts2, shifts3=shifts3)

    full2 = lambda a: pl.BlockSpec(a.shape, lambda b: (0, 0))
    full3 = lambda a: pl.BlockSpec(a.shape, lambda b: (0, 0, 0))

    out_fr = pl.pallas_call(
        kernel,
        out_shape=jax.ShapeDtypeStruct((B, Cout, Np), jnp.float32),
        grid=(B,),
        in_specs=[
            pl.BlockSpec((1, Ca_p, Np), lambda b: (b, 0, 0)),
            pl.BlockSpec((1, Cs_p, Np), lambda b: (b, 0, 0)),
            full2(w1a), full2(w1s), full2(w2), full2(w3), full3(w4),
            full3(ep1), full3(ep2), full3(ep3), full3(ep4),
            full2(mask),
        ],
        out_specs=pl.BlockSpec((1, Cout, Np), lambda b: (b, 0, 0)),
        scratch_shapes=[pltpu.VMEM((y_rows, Np + 2 * margin), jnp.float32)],
        compiler_params=pltpu.CompilerParams(
            dimension_semantics=("parallel",)),
    )(a_fr, s_fr, w1a, w1s, w2, w3, w4, ep1, ep2, ep3, ep4, mask)

    out = out_fr[:, :, :N].reshape(B, Cout, Hp, Wp)
    return out[:, :, FPAD:FPAD + H, FPAD:FPAD + W]    # crop the zero ring


# ----------------------------------------------------------------------------
# Parameter init (PyTorch-like) and pure-JAX reference for correctness check
# ----------------------------------------------------------------------------
def _conv_params(key, cin, cout, kh, kw):
    kw_, kb_ = jax.random.split(key)
    bound = 1.0 / (cin * kh * kw) ** 0.5
    w = jax.random.uniform(kw_, (kh, kw, cin, cout), jnp.float32, -bound, bound)
    b = jax.random.uniform(kb_, (cout,), jnp.float32, -bound, bound)
    return (w, b)


def _bn_params(key, c):
    k1, k2, k3, k4 = jax.random.split(key, 4)
    gamma = 1.0 + 0.1 * jax.random.normal(k1, (c,), jnp.float32)
    beta = 0.1 * jax.random.normal(k2, (c,), jnp.float32)
    rmean = 0.1 * jax.random.normal(k3, (c,), jnp.float32)
    rvar = 1.0 + 0.1 * jnp.abs(jax.random.normal(k4, (c,), jnp.float32))
    return (gamma, beta, rmean, rvar)


def init_upblock_params(key, in_filters, out_filters):
    c1_in = in_filters // 8 + 2 * out_filters
    ks = jax.random.split(key, 8)
    return {
        "conv1": _conv_params(ks[0], c1_in, out_filters, 3, 3),
        "bn1": _bn_params(ks[1], out_filters),
        "conv2": _conv_params(ks[2], out_filters, out_filters, 3, 3),
        "bn2": _bn_params(ks[3], out_filters),
        "conv3": _conv_params(ks[4], out_filters, out_filters, 2, 2),
        "bn3": _bn_params(ks[5], out_filters),
        "conv4": _conv_params(ks[6], 3 * out_filters, out_filters, 1, 1),
        "bn4": _bn_params(ks[7], out_filters),
    }


def _ref_stage(x, w, b, gamma, beta, rmean, rvar, dil, pad):
    y = lax.conv_general_dilated(
        x, w, window_strides=(1, 1), padding=[(pad, pad), (pad, pad)],
        rhs_dilation=(dil, dil),
        dimension_numbers=("NHWC", "HWIO", "NHWC"),
        precision=lax.Precision.HIGHEST)
    y = y + b
    y = jnp.where(y >= 0, y, NEG_SLOPE * y)
    sc = gamma / jnp.sqrt(rvar + BN_EPS)
    sh = beta - rmean * sc
    return y * sc + sh


def upblock_forward_ref(params, x_nchw, skip_nchw):
    p = params
    upA = pixelshuffle_nchw(x_nchw, 2, 4)
    upB = jnp.concatenate([upA, skip_nchw], axis=1)
    upB = jnp.transpose(upB, (0, 2, 3, 1))
    e1 = _ref_stage(upB, *p["conv1"], *p["bn1"], 1, 1)
    e2 = _ref_stage(e1, *p["conv2"], *p["bn2"], 2, 2)
    e3 = _ref_stage(e2, *p["conv3"], *p["bn3"], 2, 1)
    cat = jnp.concatenate([e1, e2, e3], axis=-1)
    out = _ref_stage(cat, *p["conv4"], *p["bn4"], 1, 0)
    return jnp.transpose(out, (0, 3, 1, 2))


if __name__ == "__main__":
    in_filters, out_filters = 16, 8
    B, H0, W0 = 2, 8, 8                     # x spatial before pixelshuffle(2, 4)
    key = jax.random.PRNGKey(0)
    kx, ks, kp = jax.random.split(key, 3)

    x = jax.random.normal(kx, (B, in_filters, H0, W0), jnp.float32)
    skip = jax.random.normal(ks, (B, 2 * out_filters, 2 * H0, 4 * W0), jnp.float32)
    params = init_upblock_params(kp, in_filters, out_filters)

    out = jax.block_until_ready(upblock_forward(params, x, skip))
    ref = jax.block_until_ready(upblock_forward_ref(params, x, skip))

    assert out.shape == (B, out_filters, 2 * H0, 4 * W0), out.shape
    assert bool(jnp.all(jnp.isfinite(out)))
    max_err = float(jnp.max(jnp.abs(out - ref)))
    # Kernel matmuls use bf16 operands (f32 accumulation) vs a Precision.HIGHEST
    # f32 reference -> tolerance sized for bf16 MXU quantization noise.
    assert bool(jnp.allclose(out, ref, rtol=5e-2, atol=2e-2)), max_err

    print("KERNEL_OK")
</pallas_src>

<mosaic_0001>
module attributes {stable_mosaic.version = 11 : i64} {
  func.func @_upblock_kernel(%arg0: i32, %arg1: memref<1x8x768xbf16, #tpu.memory_space<vmem>>, %arg2: memref<1x16x768xbf16, #tpu.memory_space<vmem>>, %arg3: memref<72x8xbf16, #tpu.memory_space<vmem>>, %arg4: memref<72x16xbf16, #tpu.memory_space<vmem>>, %arg5: memref<72x8xbf16, #tpu.memory_space<vmem>>, %arg6: memref<32x8xbf16, #tpu.memory_space<vmem>>, %arg7: memref<3x8x8xbf16, #tpu.memory_space<vmem>>, %arg8: memref<3x8x1xf32, #tpu.memory_space<vmem>>, %arg9: memref<3x8x1xf32, #tpu.memory_space<vmem>>, %arg10: memref<3x8x1xf32, #tpu.memory_space<vmem>>, %arg11: memref<3x8x1xf32, #tpu.memory_space<vmem>>, %arg12: memref<1x768xf32, #tpu.memory_space<vmem>>, %arg13: memref<1x8x768xf32, #tpu.memory_space<vmem>>, %arg14: memref<72x1024xf32, #tpu.memory_space<vmem>>) attributes {dimension_semantics = [#tpu.dimension_semantics<parallel>], iteration_bounds = array<i64: 2>, scalar_prefetch = 0 : i64, scratch_operands = 1 : i64, tpu.core_type = #tpu.core_type<tc>, window_params = [{transform_indices = @transform_0, window_bounds = array<i64: 1, 8, 768>}, {transform_indices = @transform_1, window_bounds = array<i64: 1, 16, 768>}, {pipeline_mode = #tpu.pipeline_mode<synchronous>, transform_indices = @transform_2, window_bounds = array<i64: 72, 8>}, {pipeline_mode = #tpu.pipeline_mode<synchronous>, transform_indices = @transform_3, window_bounds = array<i64: 72, 16>}, {pipeline_mode = #tpu.pipeline_mode<synchronous>, transform_indices = @transform_4, window_bounds = array<i64: 72, 8>}, {pipeline_mode = #tpu.pipeline_mode<synchronous>, transform_indices = @transform_5, window_bounds = array<i64: 32, 8>}, {pipeline_mode = #tpu.pipeline_mode<synchronous>, transform_indices = @transform_6, window_bounds = array<i64: 3, 8, 8>}, {pipeline_mode = #tpu.pipeline_mode<synchronous>, transform_indices = @transform_7, window_bounds = array<i64: 3, 8, 1>}, {pipeline_mode = #tpu.pipeline_mode<synchronous>, transform_indices = @transform_8, window_bounds = array<i64: 3, 8, 1>}, {pipeline_mode = #tpu.pipeline_mode<synchronous>, transform_indices = @transform_9, window_bounds = array<i64: 3, 8, 1>}, {pipeline_mode = #tpu.pipeline_mode<synchronous>, transform_indices = @transform_10, window_bounds = array<i64: 3, 8, 1>}, {pipeline_mode = #tpu.pipeline_mode<synchronous>, transform_indices = @transform_11, window_bounds = array<i64: 1, 768>}, {transform_indices = @transform_12, window_bounds = array<i64: 1, 8, 768>}]} {
    %c0 = arith.constant 0 : index
    %c0_0 = arith.constant 0 : index
    %0 = vector.load %arg12[%c0, %c0_0] : memref<1x768xf32, #tpu.memory_space<vmem>>, vector<1x768xf32>
    %cst = arith.constant 0.000000e+00 : f32
    %1 = vector.broadcast %cst : f32 to vector<72x128xf32>
    %c0_1 = arith.constant 0 : index
    %c0_2 = arith.constant 0 : index
    %2 = vector.load %arg14[%c0_1, %c0_2] : memref<72x1024xf32, #tpu.memory_space<vmem>>, vector<72x128xf32>
    tpu.vector_store %arg14[%c0_1, %c0_2], %1 {strides = array<i32>} : memref<72x1024xf32, #tpu.memory_space<vmem>>, vector<72x128xf32>,
    %c0_3 = arith.constant 0 : index
    %c896 = arith.constant 896 : index
    %3 = vector.load %arg14[%c0_3, %c896] : memref<72x1024xf32, #tpu.memory_space<vmem>>, vector<72x128xf32>
    tpu.vector_store %arg14[%c0_3, %c896], %1 {strides = array<i32>} : memref<72x1024xf32, #tpu.memory_space<vmem>>, vector<72x128xf32>,
    %c0_4 = arith.constant 0 : index
    %c0_5 = arith.constant 0 : index
    %4 = vector.load %arg3[%c0_4, %c0_5] : memref<72x8xbf16, #tpu.memory_space<vmem>>, vector<72x8xbf16>
    %c0_6 = arith.constant 0 : index
    %c0_7 = arith.constant 0 : index
    %c0_8 = arith.constant 0 : index
    %5 = vector.load %arg1[%c0_6, %c0_7, %c0_8] : memref<1x8x768xbf16, #tpu.memory_space<vmem>>, vector<1x8x768xbf16>
    %6 = vector.shape_cast %5 : vector<1x8x768xbf16> to vector<8x768xbf16>
    %cst_9 = arith.constant dense<0.000000e+00> : vector<72x768xf32>
    %7 = tpu.matmul %4, %6, %cst_9 {dimension_numbers = #tpu.dot_dimension_numbers<[1], [0], [0], [1], [0, 0, 1, 1], [], []>} : vector<72x8xbf16>, vector<8x768xbf16>, vector<72x768xf32> -> vector<72x768xf32>
    %c0_10 = arith.constant 0 : index
    %c0_11 = arith.constant 0 : index
    %8 = vector.load %arg4[%c0_10, %c0_11] : memref<72x16xbf16, #tpu.memory_space<vmem>>, vector<72x16xbf16>
    %c0_12 = arith.constant 0 : index
    %c0_13 = arith.constant 0 : index
    %c0_14 = arith.constant 0 : index
    %9 = vector.load %arg2[%c0_12, %c0_13, %c0_14] : memref<1x16x768xbf16, #tpu.memory_space<vmem>>, vector<1x16x768xbf16>
    %10 = vector.shape_cast %9 : vector<1x16x768xbf16> to vector<16x768xbf16>
    %cst_15 = arith.constant dense<0.000000e+00> : vector<72x768xf32>
    %11 = tpu.matmul %8, %10, %cst_15 {dimension_numbers = #tpu.dot_dimension_numbers<[1], [0], [0], [1], [0, 0, 1, 1], [], []>} : vector<72x16xbf16>, vector<16x768xbf16>, vector<72x768xf32> -> vector<72x768xf32>
    %12 = arith.addf %7, %11 : vector<72x768xf32>
    %c0_16 = arith.constant 0 : index
    %c128 = arith.constant 128 : index
    %13 = vector.load %arg14[%c0_16, %c128] : memref<72x1024xf32, #tpu.memory_space<vmem>>, vector<72x768xf32>
    tpu.vector_store %arg14[%c0_16, %c128], %12 {strides = array<i32>} : memref<72x1024xf32, #tpu.memory_space<vmem>>, vector<72x768xf32>,
    %c0_17 = arith.constant 0 : index
    %c91 = arith.constant 91 : index
    %14 = vector.load %arg14[%c0_17, %c91] : memref<72x1024xf32, #tpu.memory_space<vmem>>, vector<8x768xf32>
    %c8 = arith.constant 8 : index
    %c92 = arith.constant 92 : index
    %15 = vector.load %arg14[%c8, %c92] : memref<72x1024xf32, #tpu.memory_space<vmem>>, vector<8x768xf32>
    %16 = arith.addf %14, %15 : vector<8x768xf32>
    %c16 = arith.constant 16 : index
    %c93 = arith.constant 93 : index
    %17 = vector.load %arg14[%c16, %c93] : memref<72x1024xf32, #tpu.memory_space<vmem>>, vector<8x768xf32>
    %18 = arith.addf %16, %17 : vector<8x768xf32>
    %c24 = arith.constant 24 : index
    %c127 = arith.constant 127 : index
    %19 = vector.load %arg14[%c24, %c127] : memref<72x1024xf32, #tpu.memory_space<vmem>>, vector<8x768xf32>
    %20 = arith.addf %18, %19 : vector<8x768xf32>
    %c32 = arith.constant 32 : index
    %c128_18 = arith.constant 128 : index
    %21 = vector.load %arg14[%c32, %c128_18] : memref<72x1024xf32, #tpu.memory_space<vmem>>, vector<8x768xf32>
    %22 = arith.addf %20, %21 : vector<8x768xf32>
    %c40 = arith.constant 40 : index
    %c129 = arith.constant 129 : index
    %23 = vector.load %arg14[%c40, %c129] : memref<72x1024xf32, #tpu.memory_space<vmem>>, vector<8x768xf32>
    %24 = arith.addf %22, %23 : vector<8x768xf32>
    %c48 = arith.constant 48 : index
    %c163 = arith.constant 163 : index
    %25 = vector.load %arg14[%c48, %c163] : memref<72x1024xf32, #tpu.memory_space<vmem>>, vector<8x768xf32>
    %26 = arith.addf %24, %25 : vector<8x768xf32>
    %c56 = arith.constant 56 : index
    %c164 = arith.constant 164 : index
    %27 = vector.load %arg14[%c56, %c164] : memref<72x1024xf32, #tpu.memory_space<vmem>>, vector<8x768xf32>
    %28 = arith.addf %26, %27 : vector<8x768xf32>
    %c64 = arith.constant 64 : index
    %c165 = arith.constant 165 : index
    %29 = vector.load %arg14[%c64, %c165] : memref<72x1024xf32, #tpu.memory_space<vmem>>, vector<8x768xf32>
    %30 = arith.addf %28, %29 : vector<8x768xf32>
    %c0_19 = arith.constant 0 : index
    %c0_20 = arith.constant 0 : index
    %c0_21 = arith.constant 0 : index
    %31 = vector.load %arg8[%c0_19, %c0_20, %c0_21] : memref<3x8x1xf32, #tpu.memory_space<vmem>>, vector<1x8x1xf32>
    %32 = vector.shape_cast %31 : vector<1x8x1xf32> to vector<8x1xf32>
    %33 = vector.broadcast %32 : vector<8x1xf32> to vector<8x768xf32>
    %34 = arith.addf %30, %33 : vector<8x768xf32>
    %cst_22 = arith.constant 0.000000e+00 : f32
    %35 = vector.broadcast %cst_22 : f32 to vector<8x768xf32>
    %36 = arith.cmpf oge, %34, %35 : vector<8x768xf32>
    %cst_23 = arith.constant 0.00999999977 : f32
    %37 = vector.broadcast %cst_23 : f32 to vector<8x768xf32>
    %38 = arith.mulf %37, %34 : vector<8x768xf32>
    %39 = arith.select %36, %34, %38 : vector<8x768xi1>, vector<8x768xf32>
    %c1 = arith.constant 1 : index
    %c0_24 = arith.constant 0 : index
    %c0_25 = arith.constant 0 : index
    %40 = vector.load %arg8[%c1, %c0_24, %c0_25] : memref<3x8x1xf32, #tpu.memory_space<vmem>>, vector<1x8x1xf32>
    %41 = vector.shape_cast %40 : vector<1x8x1xf32> to vector<8x1xf32>
    %42 = vector.broadcast %41 : vector<8x1xf32> to vector<8x768xf32>
    %43 = arith.mulf %39, %42 : vector<8x768xf32>
    %c2 = arith.constant 2 : index
    %c0_26 = arith.constant 0 : index
    %c0_27 = arith.constant 0 : index
    %44 = vector.load %arg8[%c2, %c0_26, %c0_27] : memref<3x8x1xf32, #tpu.memory_space<vmem>>, vector<1x8x1xf32>
    %45 = vector.shape_cast %44 : vector<1x8x1xf32> to vector<8x1xf32>
    %46 = vector.broadcast %45 : vector<8x1xf32> to vector<8x768xf32>
    %47 = arith.addf %43, %46 : vector<8x768xf32>
    %48 = vector.broadcast %0 : vector<1x768xf32> to vector<8x768xf32>
    %49 = arith.mulf %47, %48 : vector<8x768xf32>
    %c0_28 = arith.constant 0 : index
    %c0_29 = arith.constant 0 : index
    %50 = vector.load %arg5[%c0_28, %c0_29] : memref<72x8xbf16, #tpu.memory_space<vmem>>, vector<72x8xbf16>
    %51 = arith.truncf %49 : vector<8x768xf32> to vector<8x768xbf16>
    %cst_30 = arith.constant dense<0.000000e+00> : vector<72x768xf32>
    %52 = tpu.matmul %50, %51, %cst_30 {dimension_numbers = #tpu.dot_dimension_numbers<[1], [0], [0], [1], [0, 0, 1, 1], [], []>} : vector<72x8xbf16>, vector<8x768xbf16>, vector<72x768xf32> -> vector<72x768xf32>
    %c0_31 = arith.constant 0 : index
    %c128_32 = arith.constant 128 : index
    %53 = vector.load %arg14[%c0_31, %c128_32] : memref<72x1024xf32, #tpu.memory_space<vmem>>, vector<72x768xf32>
    tpu.vector_store %arg14[%c0_31, %c128_32], %52 {strides = array<i32>} : memref<72x1024xf32, #tpu.memory_space<vmem>>, vector<72x768xf32>,
    %c0_33 = arith.constant 0 : index
    %c54 = arith.constant 54 : index
    %54 = vector.load %arg14[%c0_33, %c54] : memref<72x1024xf32, #tpu.memory_space<vmem>>, vector<8x768xf32>
    %c8_34 = arith.constant 8 : index
    %c56_35 = arith.constant 56 : index
    %55 = vector.load %arg14[%c8_34, %c56_35] : memref<72x1024xf32, #tpu.memory_space<vmem>>, vector<8x768xf32>
    %56 = arith.addf %54, %55 : vector<8x768xf32>
    %c16_36 = arith.constant 16 : index
    %c58 = arith.constant 58 : index
    %57 = vector.load %arg14[%c16_36, %c58] : memref<72x1024xf32, #tpu.memory_space<vmem>>, vector<8x768xf32>
    %58 = arith.addf %56, %57 : vector<8x768xf32>
    %c24_37 = arith.constant 24 : index
    %c126 = arith.constant 126 : index
    %59 = vector.load %arg14[%c24_37, %c126] : memref<72x1024xf32, #tpu.memory_space<vmem>>, vector<8x768xf32>
    %60 = arith.addf %58, %59 : vector<8x768xf32>
    %c32_38 = arith.constant 32 : index
    %c128_39 = arith.constant 128 : index
    %61 = vector.load %arg14[%c32_38, %c128_39] : memref<72x1024xf32, #tpu.memory_space<vmem>>, vector<8x768xf32>
    %62 = arith.addf %60, %61 : vector<8x768xf32>
    %c40_40 = arith.constant 40 : index
    %c130 = arith.constant 130 : index
    %63 = vector.load %arg14[%c40_40, %c130] : memref<72x1024xf32, #tpu.memory_space<vmem>>, vector<8x768xf32>
    %64 = arith.addf %62, %63 : vector<8x768xf32>
    %c48_41 = arith.constant 48 : index
    %c198 = arith.constant 198 : index
    %65 = vector.load %arg14[%c48_41, %c198] : memref<72x1024xf32, #tpu.memory_space<vmem>>, vector<8x768xf32>
    %66 = arith.addf %64, %65 : vector<8x768xf32>
    %c56_42 = arith.constant 56 : index
    %c200 = arith.constant 200 : index
    %67 = vector.load %arg14[%c56_42, %c200] : memref<72x1024xf32, #tpu.memory_space<vmem>>, vector<8x768xf32>
    %68 = arith.addf %66, %67 : vector<8x768xf32>
    %c64_43 = arith.constant 64 : index
    %c202 = arith.constant 202 : index
    %69 = vector.load %arg14[%c64_43, %c202] : memref<72x1024xf32, #tpu.memory_space<vmem>>, vector<8x768xf32>
    %70 = arith.addf %68, %69 : vector<8x768xf32>
    %c0_44 = arith.constant 0 : index
    %c0_45 = arith.constant 0 : index
    %c0_46 = arith.constant 0 : index
    %71 = vector.load %arg9[%c0_44, %c0_45, %c0_46] : memref<3x8x1xf32, #tpu.memory_space<vmem>>, vector<1x8x1xf32>
    %72 = vector.shape_cast %71 : vector<1x8x1xf32> to vector<8x1xf32>
    %73 = vector.broadcast %72 : vector<8x1xf32> to vector<8x768xf32>
    %74 = arith.addf %70, %73 : vector<8x768xf32>
    %cst_47 = arith.constant 0.000000e+00 : f32
    %75 = vector.broadcast %cst_47 : f32 to vector<8x768xf32>
    %76 = arith.cmpf oge, %74, %75 : vector<8x768xf32>
    %cst_48 = arith.constant 0.00999999977 : f32
    %77 = vector.broadcast %cst_48 : f32 to vector<8x768xf32>
    %78 = arith.mulf %77, %74 : vector<8x768xf32>
    %79 = arith.select %76, %74, %78 : vector<8x768xi1>, vector<8x768xf32>
    %c1_49 = arith.constant 1 : index
    %c0_50 = arith.constant 0 : index
    %c0_51 = arith.constant 0 : index
    %80 = vector.load %arg9[%c1_49, %c0_50, %c0_51] : memref<3x8x1xf32, #tpu.memory_space<vmem>>, vector<1x8x1xf32>
    %81 = vector.shape_cast %80 : vector<1x8x1xf32> to vector<8x1xf32>
    %82 = vector.broadcast %81 : vector<8x1xf32> to vector<8x768xf32>
    %83 = arith.mulf %79, %82 : vector<8x768xf32>
    %c2_52 = arith.constant 2 : index
    %c0_53 = arith.constant 0 : index
    %c0_54 = arith.constant 0 : index
    %84 = vector.load %arg9[%c2_52, %c0_53, %c0_54] : memref<3x8x1xf32, #tpu.memory_space<vmem>>, vector<1x8x1xf32>
    %85 = vector.shape_cast %84 : vector<1x8x1xf32> to vector<8x1xf32>
    %86 = vector.broadcast %85 : vector<8x1xf32> to vector<8x768xf32>
    %87 = arith.addf %83, %86 : vector<8x768xf32>
    %88 = vector.broadcast %0 : vector<1x768xf32> to vector<8x768xf32>
    %89 = arith.mulf %87, %88 : vector<8x768xf32>
    %c0_55 = arith.constant 0 : index
    %c0_56 = arith.constant 0 : index
    %90 = vector.load %arg6[%c0_55, %c0_56] : memref<32x8xbf16, #tpu.memory_space<vmem>>, vector<32x8xbf16>
    %91 = arith.truncf %89 : vector<8x768xf32> to vector<8x768xbf16>
    %cst_57 = arith.constant dense<0.000000e+00> : vector<32x768xf32>
    %92 = tpu.matmul %90, %91, %cst_57 {dimension_numbers = #tpu.dot_dimension_numbers<[1], [0], [0], [1], [0, 0, 1, 1], [], []>} : vector<32x8xbf16>, vector<8x768xbf16>, vector<32x768xf32> -> vector<32x768xf32>
    %c0_58 = arith.constant 0 : index
    %c128_59 = arith.constant 128 : index
    %93 = vector.load %arg14[%c0_58, %c128_59] : memref<72x1024xf32, #tpu.memory_space<vmem>>, vector<32x768xf32>
    tpu.vector_store %arg14[%c0_58, %c128_59], %92 {strides = array<i32>} : memref<72x1024xf32, #tpu.memory_space<vmem>>, vector<32x768xf32>,
    %c0_60 = arith.constant 0 : index
    %c91_61 = arith.constant 91 : index
    %94 = vector.load %arg14[%c0_60, %c91_61] : memref<72x1024xf32, #tpu.memory_space<vmem>>, vector<8x768xf32>
    %c8_62 = arith.constant 8 : index
    %c93_63 = arith.constant 93 : index
    %95 = vector.load %arg14[%c8_62, %c93_63] : memref<72x1024xf32, #tpu.memory_space<vmem>>, vector<8x768xf32>
    %96 = arith.addf %94, %95 : vector<8x768xf32>
    %c16_64 = arith.constant 16 : index
    %c163_65 = arith.constant 163 : index
    %97 = vector.load %arg14[%c16_64, %c163_65] : memref<72x1024xf32, #tpu.memory_space<vmem>>, vector<8x768xf32>
    %98 = arith.addf %96, %97 : vector<8x768xf32>
    %c24_66 = arith.constant 24 : index
    %c165_67 = arith.constant 165 : index
    %99 = vector.load %arg14[%c24_66, %c165_67] : memref<72x1024xf32, #tpu.memory_space<vmem>>, vector<8x768xf32>
    %100 = arith.addf %98, %99 : vector<8x768xf32>
    %c0_68 = arith.constant 0 : index
    %c0_69 = arith.constant 0 : index
    %c0_70 = arith.constant 0 : index
    %101 = vector.load %arg10[%c0_68, %c0_69, %c0_70] : memref<3x8x1xf32, #tpu.memory_space<vmem>>, vector<1x8x1xf32>
    %102 = vector.shape_cast %101 : vector<1x8x1xf32> to vector<8x1xf32>
    %103 = vector.broadcast %102 : vector<8x1xf32> to vector<8x768xf32>
    %104 = arith.addf %100, %103 : vector<8x768xf32>
    %cst_71 = arith.constant 0.000000e+00 : f32
    %105 = vector.broadcast %cst_71 : f32 to vector<8x768xf32>
    %106 = arith.cmpf oge, %104, %105 : vector<8x768xf32>
    %cst_72 = arith.constant 0.00999999977 : f32
    %107 = vector.broadcast %cst_72 : f32 to vector<8x768xf32>
    %108 = arith.mulf %107, %104 : vector<8x768xf32>
    %109 = arith.select %106, %104, %108 : vector<8x768xi1>, vector<8x768xf32>
    %c1_73 = arith.constant 1 : index
    %c0_74 = arith.constant 0 : index
    %c0_75 = arith.constant 0 : index
    %110 = vector.load %arg10[%c1_73, %c0_74, %c0_75] : memref<3x8x1xf32, #tpu.memory_space<vmem>>, vector<1x8x1xf32>
    %111 = vector.shape_cast %110 : vector<1x8x1xf32> to vector<8x1xf32>
    %112 = vector.broadcast %111 : vector<8x1xf32> to vector<8x768xf32>
    %113 = arith.mulf %109, %112 : vector<8x768xf32>
    %c2_76 = arith.constant 2 : index
    %c0_77 = arith.constant 0 : index
    %c0_78 = arith.constant 0 : index
    %114 = vector.load %arg10[%c2_76, %c0_77, %c0_78] : memref<3x8x1xf32, #tpu.memory_space<vmem>>, vector<1x8x1xf32>
    %115 = vector.shape_cast %114 : vector<1x8x1xf32> to vector<8x1xf32>
    %116 = vector.broadcast %115 : vector<8x1xf32> to vector<8x768xf32>
    %117 = arith.addf %113, %116 : vector<8x768xf32>
    %c0_79 = arith.constant 0 : index
    %c0_80 = arith.constant 0 : index
    %c0_81 = arith.constant 0 : index
    %118 = vector.load %arg7[%c0_79, %c0_80, %c0_81] : memref<3x8x8xbf16, #tpu.memory_space<vmem>>, vector<1x8x8xbf16>
    %119 = vector.shape_cast %118 : vector<1x8x8xbf16> to vector<8x8xbf16>
    %120 = arith.truncf %49 : vector<8x768xf32> to vector<8x768xbf16>
    %cst_82 = arith.constant dense<0.000000e+00> : vector<8x768xf32>
    %121 = tpu.matmul %119, %120, %cst_82 {dimension_numbers = #tpu.dot_dimension_numbers<[1], [0], [0], [1], [0, 0, 1, 1], [], []>} : vector<8x8xbf16>, vector<8x768xbf16>, vector<8x768xf32> -> vector<8x768xf32>
    %c1_83 = arith.constant 1 : index
    %c0_84 = arith.constant 0 : index
    %c0_85 = arith.constant 0 : index
    %122 = vector.load %arg7[%c1_83, %c0_84, %c0_85] : memref<3x8x8xbf16, #tpu.memory_space<vmem>>, vector<1x8x8xbf16>
    %123 = vector.shape_cast %122 : vector<1x8x8xbf16> to vector<8x8xbf16>
    %124 = arith.truncf %89 : vector<8x768xf32> to vector<8x768xbf16>
    %cst_86 = arith.constant dense<0.000000e+00> : vector<8x768xf32>
    %125 = tpu.matmul %123, %124, %cst_86 {dimension_numbers = #tpu.dot_dimension_numbers<[1], [0], [0], [1], [0, 0, 1, 1], [], []>} : vector<8x8xbf16>, vector<8x768xbf16>, vector<8x768xf32> -> vector<8x768xf32>
    %126 = arith.addf %121, %125 : vector<8x768xf32>
    %c2_87 = arith.constant 2 : index
    %c0_88 = arith.constant 0 : index
    %c0_89 = arith.constant 0 : index
    %127 = vector.load %arg7[%c2_87, %c0_88, %c0_89] : memref<3x8x8xbf16, #tpu.memory_space<vmem>>, vector<1x8x8xbf16>
    %128 = vector.shape_cast %127 : vector<1x8x8xbf16> to vector<8x8xbf16>
    %129 = arith.truncf %117 : vector<8x768xf32> to vector<8x768xbf16>
    %cst_90 = arith.constant dense<0.000000e+00> : vector<8x768xf32>
    %130 = tpu.matmul %128, %129, %cst_90 {dimension_numbers = #tpu.dot_dimension_numbers<[1], [0], [0], [1], [0, 0, 1, 1], [], []>} : vector<8x8xbf16>, vector<8x768xbf16>, vector<8x768xf32> -> vector<8x768xf32>
    %131 = arith.addf %126, %130 : vector<8x768xf32>
    %c0_91 = arith.constant 0 : index
    %c0_92 = arith.constant 0 : index
    %c0_93 = arith.constant 0 : index
    %132 = vector.load %arg11[%c0_91, %c0_92, %c0_93] : memref<3x8x1xf32, #tpu.memory_space<vmem>>, vector<1x8x1xf32>
    %133 = vector.shape_cast %132 : vector<1x8x1xf32> to vector<8x1xf32>
    %134 = vector.broadcast %133 : vector<8x1xf32> to vector<8x768xf32>
    %135 = arith.addf %131, %134 : vector<8x768xf32>
    %cst_94 = arith.constant 0.000000e+00 : f32
    %136 = vector.broadcast %cst_94 : f32 to vector<8x768xf32>
    %137 = arith.cmpf oge, %135, %136 : vector<8x768xf32>
    %cst_95 = arith.constant 0.00999999977 : f32
    %138 = vector.broadcast %cst_95 : f32 to vector<8x768xf32>
    %139 = arith.mulf %138, %135 : vector<8x768xf32>
    %140 = arith.select %137, %135, %139 : vector<8x768xi1>, vector<8x768xf32>
    %c1_96 = arith.constant 1 : index
    %c0_97 = arith.constant 0 : index
    %c0_98 = arith.constant 0 : index
    %141 = vector.load %arg11[%c1_96, %c0_97, %c0_98] : memref<3x8x1xf32, #tpu.memory_space<vmem>>, vector<1x8x1xf32>
    %142 = vector.shape_cast %141 : vector<1x8x1xf32> to vector<8x1xf32>
    %143 = vector.broadcast %142 : vector<8x1xf32> to vector<8x768xf32>
    %144 = arith.mulf %140, %143 : vector<8x768xf32>
    %c2_99 = arith.constant 2 : index
    %c0_100 = arith.constant 0 : index
    %c0_101 = arith.constant 0 : index
    %145 = vector.load %arg11[%c2_99, %c0_100, %c0_101] : memref<3x8x1xf32, #tpu.memory_space<vmem>>, vector<1x8x1xf32>
    %146 = vector.shape_cast %145 : vector<1x8x1xf32> to vector<8x1xf32>
    %147 = vector.broadcast %146 : vector<8x1xf32> to vector<8x768xf32>
    %148 = arith.addf %144, %147 : vector<8x768xf32>
    %c0_102 = arith.constant 0 : index
    %c0_103 = arith.constant 0 : index
    %c0_104 = arith.constant 0 : index
    %149 = vector.load %arg13[%c0_102, %c0_103, %c0_104] : memref<1x8x768xf32, #tpu.memory_space<vmem>>, vector<1x8x768xf32>
    %150 = vector.shape_cast %149 : vector<1x8x768xf32> to vector<8x768xf32>
    %151 = vector.shape_cast %148 : vector<8x768xf32> to vector<1x8x768xf32>
    tpu.vector_store %arg13[%c0_102, %c0_103, %c0_104], %151 {strides = array<i32>} : memref<1x8x768xf32, #tpu.memory_space<vmem>>, vector<1x8x768xf32>,
    return
  }
  func.func @transform_0(%arg0: i32) -> (i32, i32, i32) {
    %c0_i32 = arith.constant 0 : i32
    %c0_i32_0 = arith.constant 0 : i32
    %c0_i32_1 = arith.constant 0 : i32
    return %arg0, %c0_i32, %c0_i32_0 : i32, i32, i32
  }
  func.func @transform_1(%arg0: i32) -> (i32, i32, i32) {
    %c0_i32 = arith.constant 0 : i32
    %c0_i32_0 = arith.constant 0 : i32
    %c0_i32_1 = arith.constant 0 : i32
    return %arg0, %c0_i32, %c0_i32_0 : i32, i32, i32
  }
  func.func @transform_2(%arg0: i32) -> (i32, i32) {
    %c0_i32 = arith.constant 0 : i32
    %c0_i32_0 = arith.constant 0 : i32
    %c0_i32_1 = arith.constant 0 : i32
    return %c0_i32, %c0_i32_0 : i32, i32
  }
  func.func @transform_3(%arg0: i32) -> (i32, i32) {
    %c0_i32 = arith.constant 0 : i32
    %c0_i32_0 = arith.constant 0 : i32
    %c0_i32_1 = arith.constant 0 : i32
    return %c0_i32, %c0_i32_0 : i32, i32
  }
  func.func @transform_4(%arg0: i32) -> (i32, i32) {
    %c0_i32 = arith.constant 0 : i32
    %c0_i32_0 = arith.constant 0 : i32
    %c0_i32_1 = arith.constant 0 : i32
    return %c0_i32, %c0_i32_0 : i32, i32
  }
  func.func @transform_5(%arg0: i32) -> (i32, i32) {
    %c0_i32 = arith.constant 0 : i32
    %c0_i32_0 = arith.constant 0 : i32
    %c0_i32_1 = arith.constant 0 : i32
    return %c0_i32, %c0_i32_0 : i32, i32
  }
  func.func @transform_6(%arg0: i32) -> (i32, i32, i32) {
    %c0_i32 = arith.constant 0 : i32
    %c0_i32_0 = arith.constant 0 : i32
    %c0_i32_1 = arith.constant 0 : i32
    %c0_i32_2 = arith.constant 0 : i32
    return %c0_i32, %c0_i32_0, %c0_i32_1 : i32, i32, i32
  }
  func.func @transform_7(%arg0: i32) -> (i32, i32, i32) {
    %c0_i32 = arith.constant 0 : i32
    %c0_i32_0 = arith.constant 0 : i32
    %c0_i32_1 = arith.constant 0 : i32
    %c0_i32_2 = arith.constant 0 : i32
    return %c0_i32, %c0_i32_0, %c0_i32_1 : i32, i32, i32
  }
  func.func @transform_8(%arg0: i32) -> (i32, i32, i32) {
    %c0_i32 = arith.constant 0 : i32
    %c0_i32_0 = arith.constant 0 : i32
    %c0_i32_1 = arith.constant 0 : i32
    %c0_i32_2 = arith.constant 0 : i32
    return %c0_i32, %c0_i32_0, %c0_i32_1 : i32, i32, i32
  }
  func.func @transform_9(%arg0: i32) -> (i32, i32, i32) {
    %c0_i32 = arith.constant 0 : i32
    %c0_i32_0 = arith.constant 0 : i32
    %c0_i32_1 = arith.constant 0 : i32
    %c0_i32_2 = arith.constant 0 : i32
    return %c0_i32, %c0_i32_0, %c0_i32_1 : i32, i32, i32
  }
  func.func @transform_10(%arg0: i32) -> (i32, i32, i32) {
    %c0_i32 = arith.constant 0 : i32
    %c0_i32_0 = arith.constant 0 : i32
    %c0_i32_1 = arith.constant 0 : i32
    %c0_i32_2 = arith.constant 0 : i32
    return %c0_i32, %c0_i32_0, %c0_i32_1 : i32, i32, i32
  }
  func.func @transform_11(%arg0: i32) -> (i32, i32) {
    %c0_i32 = arith.constant 0 : i32
    %c0_i32_0 = arith.constant 0 : i32
    %c0_i32_1 = arith.constant 0 : i32
    return %c0_i32, %c0_i32_0 : i32, i32
  }
  func.func @transform_12(%arg0: i32) -> (i32, i32, i32) {
    %c0_i32 = arith.constant 0 : i32
    %c0_i32_0 = arith.constant 0 : i32
    %c0_i32_1 = arith.constant 0 : i32
    return %arg0, %c0_i32, %c0_i32_0 : i32, i32, i32
  }
}

</mosaic_0001>

<bundles_post_ra>
// kernel: upblock_forward.1
= control target key start
LH: loop header
LB: loop body
LE: loop exit
PB: predicated region body
PF: predicated region fallthrough
CT: control target
= control target key end

     0   :  { %s3622_s21 = smov 0   ;;  %s5001_s0 = inlined_call_operand.vmem [shape: bf16[2,8,768], index: 0, kind: input, shape index: {}]   ;;  %s5002_s1 = inlined_call_operand.vmem [shape: bf16[2,16,768], index: 1, kind: input, shape index: {}]   ;;  %s5003_s2 = inlined_call_operand.vmem [shape: bf16[72,8], index: 2, kind: input, shape index: {}]   ;;  %s5004_s3 = inlined_call_operand.vmem [shape: bf16[72,16], index: 3, kind: input, shape index: {}]   ;;  %s5005_s4 = inlined_call_operand.vmem [shape: bf16[72,8], index: 4, kind: input, shape index: {}]   ;;  %s5006_s5 = inlined_call_operand.vmem [shape: bf16[32,8], index: 5, kind: input, shape index: {}]   ;;  %s5007_s6 = inlined_call_operand.vmem [shape: bf16[3,8,8], index: 6, kind: input, shape index: {}]   ;;  %s5008_s7 = inlined_call_operand.vmem [shape: f32[3,8,1], index: 7, kind: input, shape index: {}]   ;;  %s5009_s8 = inlined_call_operand.vmem [shape: f32[3,8,1], index: 8, kind: input, shape index: {}]   ;;  %s5010_s9 = inlined_call_operand.vmem [shape: f32[3,8,1], index: 9, kind: input, shape index: {}]   ;;  %s5011_s10 = inlined_call_operand.vmem [shape: f32[3,8,1], index: 10, kind: input, shape index: {}]   ;;  %s5012_s11 = inlined_call_operand.vmem [shape: f32[1,768], index: 11, kind: input, shape index: {}]   ;;  %s5013_s12 = inlined_call_operand.vmem [shape: f32[2,8,768], index: 12, kind: output, shape index: {}]  }
   0x1 LB: > { %s3262_s22 = sadd.s32 4294967295, %s3538_s21   ;;  %p3266_p0 = scmp.ge.s32.totalorder %s3538_s21, 1  ;;  %s3538_s21 = sphi %s3622_s21, %s22_s21  }
   0x2   : > { %p372_p1 = scmp.lt.s32.totalorder %s3538_s21, 3 }
   0x4   : > { %p373_p2 = pnand %p3266_p0, %p372_p1 }
   0x5   : > { %p419_p3 = scmp.lt.s32.totalorder (!%p373_p2), %s3262_s22, 1  ;;  %s3542_s19 = smov (!%p373_p2), 127  }
   0x6   : > { %376 = sbr.rel (%p373_p2) target bundleno = 1904 (0x770), region = 68  ;;  %s3544_s25 = smov (!%p373_p2), 92  }
   0x7   : > { %s3545_s30 = smov (!%p373_p2), 91   ;;  %s3546_s13 = smov (!%p373_p2), 90  }
   0x8   : > { %s3547_s16 = smov (!%p373_p2), 56   ;;  %s3548_s17 = smov (!%p373_p2), 55  }
   0x9   : > { %s3549_s20 = smov (!%p373_p2), 54   ;;  %s3554_s14 = smov (!%p373_p2), 110  }
   0xb   : > { %s5015_s22 = smov (!%p419_p3, %s3262_s22), 1  ;;  %v3486_v11 = vld [vmem:[%s5004_s3] sm:$0xff]  ;;  %vm534_vm0 = vcmask 130048   ;;  %v3487_v13 = vld [vmem:[%s5004_s3 + $0x8] sm:$0xff]  ;;  %v3488_v14 = vld [vmem:[%s5004_s3 + $0x10] sm:$0xff]  ;;  %vm802_vm1 = vcmask 1043456  }
   0xc   : > { %s3503_s23 = smul.u32 48, %s5015_s22  ;;  %v3489_v28 = vld [vmem:[%s5004_s3 + $0x18] sm:$0xff]  ;;  %v474_v29 = vld [vmem:[%s5004_s3 + $0x20] sm:$0xf]  ;;  %vm786_vm2 = vcmask 64512   ;;  %v3710_v33 = vld [vmem:[%s5003_s2 + $0x8] sm:$0xff] }
   0xd   : > { %s3502_s15 = smul.u32 24, %s5015_s22  ;;  %v498_v30 = vunpack.c.l.b16 %v474_v29  ;;  %v3699_v32 = vld [vmem:[%s5003_s2] sm:$0xff]  ;;  %v3721_v34 = vld [vmem:[%s5003_s2 + $0x10] sm:$0xff]  ;;  %v3736_v45 = vld [vmem:[%s5003_s2 + $0x18] sm:$0xff]  ;;  %vm1108_vm3 = vcmask 1039360   ;;  %vm1157_vm4 = vcmask 1031168  }
   0xe   : > { %s3638_s26 = scalar_lea.vmem %s5002_s1, %s3503_s23  ;;  %v462_v56 = vld [vmem:[%s5003_s2 + $0x20] sm:$0xf]  ;;  %vm1206_vm5 = vcmask 752640   ;;  %vm1251_vm6 = vcmask 744448   ;;  %vm1299_vm7 = vcmask 736256   ;;  %vm1348_vm8 = vcmask 457728  }
   0xf   : > { %v3288_v0 = vld [vmem:[%s3638_s26] sm:$0xf]  ;;  %v3493_v1 = vld [vmem:[%s3638_s26 + $0x14] sm:$0xf0]  ;;  %v3490_v2 = vld [vmem:[%s3638_s26 + $0x4] sm:$0xf]  ;;  %s3670_s18 = scalar_lea.vmem %s5001_s0, %s3502_s15  ;;  %v503_v31 = vpack.c.b16 %v498_v30, %v498_v30  ;;  %v765_v57 = vunpack.c.l.b16 %v462_v56 }
  0x10   : > { %v3289_v3 = vor.u32 %v3493_v1, %v3288_v0  ;;  %v3290_v4 = vld [vmem:[%s3638_s26 + $0x18] sm:$0xf0]  ;;  %v3296_v5 = vld [vmem:[%s3638_s26 + $0x8] sm:$0xf]  ;;  %v3494_v6 = vld [vmem:[%s3638_s26 + $0x1c] sm:$0xf0] }
  0x11   : > { %v3293_v7 = vor.u32 %v3490_v2, %v3290_v4  ;;  %v3297_v8 = vor.u32 %v3494_v6, %v3296_v5  ;;  %v3491_v9 = vld [vmem:[%s3638_s26 + $0xc] sm:$0xf]  ;;  %v3298_v10 = vld [vmem:[%s3638_s26 + $0x20] sm:$0xf0]  ;;  %v3304_v15 = vld [vmem:[%s3638_s26 + $0x10] sm:$0xf]  ;;  %v3767_v61 = vpack.c.b16 %v765_v57, %v765_v57 }
  0x12   : > { %557 = vmatpush.bf16.msra.mxu0 %v3289_v3  ;;  %v3301_v12 = vor.u32 %v3491_v9, %v3298_v10  ;;  %v3495_v16 = vld [vmem:[%s3638_s26 + $0x24] sm:$0xf0]  ;;  %v3492_v17 = vld [vmem:[%s3638_s26 + $0x14] sm:$0xf]  ;;  %v3306_v19 = vld [vmem:[%s3638_s26 + $0x28] sm:$0xf0] }
  0x13   : > { %590 = vmatpush.bf16.msra.mxu1 %v3293_v7  ;;  %623 = vmatpush.bf16.msra.mxu2 %v3297_v8  ;;  %v3305_v18 = vor.u32 %v3495_v16, %v3304_v15  ;;  %v463_v20 = vld [vmem:[%s3670_s18] sm:$0xff]  ;;  %v3309_v21 = vor.u32 %v3492_v17, %v3306_v19  ;;  %v464_v35 = vld [vmem:[%s3670_s18 + $0x8] sm:$0xff]  ;;  %v465_v36 = vld [vmem:[%s3670_s18 + $0x10] sm:$0xff]  ;;  %v3540_v15 = vmov 0.0   ;;  %s3541_s18 = smov 126   ;;  %vm1397_vm9 = vcmask 449536  }
  0x14   : > { %656 = vmatpush.bf16.msra.mxu3 %v3301_v12  ;;  %v774_v22 = vunpack.c.l.b16 %v463_v20  ;;  %v775_v23 = vunpack.c.h.b16 %v463_v20  ;;  %v776_v37 = vunpack.c.l.b16 %v464_v35  ;;  %v777_v38 = vunpack.c.h.b16 %v464_v35  ;;  %1143 = vrot.lane.b32.xlu2 %v3540_v15, %s3541_s18  ;;  %s3555_s15 = smov 108  }
  0x15   : > { %3310 = vmatmul.msk.bf16.vlgmr.msra.gmra.mxu0 %vm534_vm0, %v3486_v11  ;;  %v778_v39 = vunpack.c.l.b16 %v465_v36  ;;  %v779_v43 = vunpack.c.h.b16 %v465_v36  ;;  %1094 = vrot.lane.b32.xlu1 %v3540_v15, %s3542_s19  ;;  %v3543_v20 = vmov 0   ;;  %vm1446_vm10 = vcmask 441344  }
  0x16   : > { %3315 = vmatmul.msk.bf16.vlgmr.msra.gmra.mxu1 %vm534_vm0, %v3486_v11  ;;  %3320 = vmatmul.msk.bf16.vlgmr.msra.gmra.mxu2 %vm534_vm0, %v3486_v11  ;;  %v780_v24 = vpack.c.b16 %v774_v22, %v774_v22  ;;  %v781_v25 = vpack.c.b16 %v775_v23, %v775_v23  ;;  %v782_v40 = vpack.c.b16 %v776_v37, %v776_v37 }
  0x17   : > { %3325 = vmatmul.msk.bf16.vlgmr.msra.gmra.mxu3 %vm534_vm0, %v3486_v11  ;;  %689 = vmatpush.bf16.msrb.mxu0 %v3305_v18  ;;  %v783_v41 = vpack.c.b16 %v777_v38, %v777_v38  ;;  %v784_v42 = vpack.c.b16 %v778_v39, %v778_v39  ;;  %v785_v49 = vpack.c.b16 %v779_v43, %v779_v43 }
  0x18   : > { %722 = vmatpush.bf16.msrb.mxu1 %v3309_v21  ;;  %v804_v26 = vsel %vm802_vm1, %v780_v24, 0  ;;  %v807_v27 = vsel %vm802_vm1, %v781_v25, 0  ;;  %v810_v46 = vsel %vm802_vm1, %v782_v40, 0  ;;  %3529 = vset.pattern.permute.xlu0 %v3543_v20  ;;  %v1467_v21 = vld [vmem:[%s5008_s7] sm:$0xff] }
  0x19   : > { %828 = vmatpush.bf16.msrb.mxu2 %v804_v26  ;;  %861 = vmatpush.bf16.msrb.mxu3 %v807_v27  ;;  %v813_v47 = vsel %vm802_vm1, %v783_v41, 0  ;;  %v816_v48 = vsel %vm802_vm1, %v784_v42, 0  ;;  %v819_v51 = vsel %vm802_vm1, %v785_v49, 0  ;;  %v3387_v26 = vld [vmem:[%s5008_s7 + $0x10] sm:$0xff] }
  0x1a   : > { %3531 = vset.pattern.permute.xlu2 %v3543_v20  ;;  %1470 = vperm.xlu0 %3529, %v1467_v21  }
  0x1b   : > { %894 = vmatpush.bf16.msra.mxu0 %v810_v46  ;;  %3530 = vset.pattern.permute.xlu1 %v3543_v20 }
  0x1c   : > { %927 = vmatpush.bf16.msra.mxu1 %v813_v47  ;;  %1192 = vrot.lane.b32.xlu2 %v3540_v15, %s3544_s25 }
  0x1d   : > { %960 = vmatpush.bf16.msra.mxu2 %v816_v48  ;;  %993 = vmatpush.bf16.msra.mxu3 %v819_v51 }
  0x24   : > { %1519 = vperm.xlu2 %3531, %v3387_v26  }
  0x25   : > { %3311 = vmatmul.msk.bf16.gmra.mxu0 %vm534_vm0, %v3487_v13 }
  0x26   : > { %3316 = vmatmul.msk.bf16.gmra.mxu1 %vm534_vm0, %v3487_v13  ;;  %3321 = vmatmul.msk.bf16.gmra.mxu2 %vm534_vm0, %v3487_v13 }
  0x27   : > { %3326 = vmatmul.msk.bf16.gmra.mxu3 %vm534_vm0, %v3487_v13 }
  0x35   : > { %3312 = vmatmul.msk.bf16.gmra.mxu0 %vm534_vm0, %v3488_v14 }
  0x36   : > { %3317 = vmatmul.msk.bf16.gmra.mxu1 %vm534_vm0, %v3488_v14  ;;  %3322 = vmatmul.msk.bf16.gmra.mxu2 %vm534_vm0, %v3488_v14 }
  0x37   : > { %3327 = vmatmul.msk.bf16.gmra.mxu3 %vm534_vm0, %v3488_v14 }
  0x45   : > { %3313 = vmatmul.msk.bf16.gmra.mxu0 %vm534_vm0, %v3489_v28 }
  0x46   : > { %3318 = vmatmul.msk.bf16.gmra.mxu1 %vm534_vm0, %v3489_v28  ;;  %3323 = vmatmul.msk.bf16.gmra.mxu2 %vm534_vm0, %v3489_v28 }
  0x47   : > { %3328 = vmatmul.msk.bf16.gmra.mxu3 %vm534_vm0, %v3489_v28 }
  0x55   : > { %3314 = vmatmul.msk.bf16.gmra.mxu0 %vm534_vm0, %v503_v31 }
  0x56   : > { %3319 = vmatmul.msk.bf16.gmra.mxu1 %vm534_vm0, %v503_v31  ;;  %3324 = vmatmul.msk.bf16.gmra.mxu2 %vm534_vm0, %v503_v31 }
  0x57   : > { %3329 = vmatmul.msk.bf16.gmra.mxu3 %vm534_vm0, %v503_v31 }
  0x65   : > { %3330 = vmatmul.msk.bf16.vlgmr.msrb.gmra.mxu0 %vm534_vm0, %v3486_v11 }
  0x66   : > { %3335 = vmatmul.msk.bf16.vlgmr.msrb.gmra.mxu1 %vm534_vm0, %v3486_v11  ;;  %3356 = vmatmul.msk.bf16.vlgmr.msrb.gmra.mxu2 %vm786_vm2, %v3699_v32 }
  0x67   : > { %3361 = vmatmul.msk.bf16.vlgmr.msrb.gmra.mxu3 %vm786_vm2, %v3699_v32 }
  0x75   : > { %3331 = vmatmul.msk.bf16.gmra.mxu0 %vm534_vm0, %v3487_v13 }
  0x76   : > { %3336 = vmatmul.msk.bf16.gmra.mxu1 %vm534_vm0, %v3487_v13  ;;  %3357 = vmatmul.msk.bf16.gmra.mxu2 %vm786_vm2, %v3710_v33 }
  0x77   : > { %3362 = vmatmul.msk.bf16.gmra.mxu3 %vm786_vm2, %v3710_v33 }
  0x85   : > { %3332 = vmatmul.msk.bf16.gmra.mxu0 %vm534_vm0, %v3488_v14 }
  0x86   : > { %3337 = vmatmul.msk.bf16.gmra.mxu1 %vm534_vm0, %v3488_v14  ;;  %3358 = vmatmul.msk.bf16.gmra.mxu2 %vm786_vm2, %v3721_v34 }
  0x87   : > { %3363 = vmatmul.msk.bf16.gmra.mxu3 %vm786_vm2, %v3721_v34 }
  0x92   : > { %v3731_v44 = vpop.f32.mrf.mxu0 }
  0x93   : > { %v3741_v50 = vpop.f32.mrf.mxu1 }
  0x95   : > { %3333 = vmatmul.msk.bf16.gmra.mxu0 %vm534_vm0, %v3489_v28 }
  0x96   : > { %3338 = vmatmul.msk.bf16.gmra.mxu1 %vm534_vm0, %v3489_v28  ;;  %3359 = vmatmul.msk.bf16.gmra.mxu2 %vm786_vm2, %v3736_v45 }
  0x97   : > { %3364 = vmatmul.msk.bf16.gmra.mxu3 %vm786_vm2, %v3736_v45 }
  0x99   : > { %v3750_v52 = vpop.f32.mrf.mxu2 }
  0x9a   : > { %v3752_v53 = vpop.f32.mrf.mxu0  ;;  %v3754_v54 = vpop.f32.mrf.mxu3 }
  0x9b   : > { %v3756_v55 = vpop.f32.mrf.mxu1 }
  0xa1   : > { %v3761_v58 = vpop.f32.mrf.mxu2 }
  0xa2   : > { %v3763_v59 = vpop.f32.mrf.mxu0  ;;  %v3765_v60 = vpop.f32.mrf.mxu3 }
  0xa3   : > { %v3769_v62 = vpop.f32.mrf.mxu1 }
  0xa5   : > { %3334 = vmatmul.msk.bf16.gmra.mxu0 %vm534_vm0, %v503_v31 }
  0xa6   : > { %3339 = vmatmul.msk.bf16.gmra.mxu1 %vm534_vm0, %v503_v31  ;;  %3360 = vmatmul.msk.bf16.gmra.mxu2 %vm786_vm2, %v3767_v61  ;;  %v3386_v31 = vld [vmem:[%s5008_s7 + $0x8] sm:$0xff]  ;;  %vm1627_vm0 = vcmask 302080  }
  0xa7   : > { %3365 = vmatmul.msk.bf16.gmra.mxu3 %vm786_vm2, %v3767_v61  ;;  %1505 = vperm.xlu1 %3530, %v3386_v31  }
  0xa9   : > { %v3777_v63 = vpop.f32.mrf.mxu2 }
  0xaa   : > { %v3779_v0 = vpop.f32.mrf.mxu0  ;;  %v3781_v1 = vpop.f32.mrf.mxu3 }
  0xab   : > { %v3783_v2 = vpop.f32.mrf.mxu1 }
  0xb1   : > { %v3785_v3 = vpop.f32.mrf.mxu2 }
  0xb2   : > { %v3787_v4 = vpop.f32.mrf.mxu0  ;;  %v3789_v5 = vpop.f32.mrf.mxu3 }
  0xb3   : > { %v3791_v6 = vpop.f32.mrf.mxu1 }
  0xb5   : > { %3366 = vmatmul.msk.bf16.vlgmr.msra.gmra.mxu0 %vm786_vm2, %v3699_v32 }
  0xb6   : > { %3371 = vmatmul.msk.bf16.vlgmr.msra.gmra.mxu1 %vm786_vm2, %v3699_v32  ;;  %3376 = vmatmul.msk.bf16.vlgmr.msra.gmra.mxu2 %vm786_vm2, %v3699_v32 }
  0xb7   : > { %3381 = vmatmul.msk.bf16.vlgmr.msra.gmra.mxu3 %vm786_vm2, %v3699_v32 }
  0xb9   : > { %v3801_v7 = vpop.f32.mrf.mxu2 }
  0xba   : > { %v3803_v8 = vpop.f32.mrf.mxu0  ;;  %v3805_v9 = vpop.f32.mrf.mxu3 }
  0xbb   : > { %v3807_v10 = vpop.f32.mrf.mxu1 }
  0xc1   : > { %v3809_v11 = vpop.f32.mrf.mxu2 }
  0xc2   : > { %v3811_v12 = vpop.f32.mrf.mxu0  ;;  %v3813_v13 = vpop.f32.mrf.mxu3 }
  0xc3   : > { %v3815_v14 = vpop.f32.mrf.mxu1 }
  0xc5   : > { %3367 = vmatmul.msk.bf16.gmra.mxu0 %vm786_vm2, %v3710_v33 }
  0xc6   : > { %3372 = vmatmul.msk.bf16.gmra.mxu1 %vm786_vm2, %v3710_v33  ;;  %3377 = vmatmul.msk.bf16.gmra.mxu2 %vm786_vm2, %v3710_v33 }
  0xc7   : > { %3382 = vmatmul.msk.bf16.gmra.mxu3 %vm786_vm2, %v3710_v33 }
  0xc9   : > { %v3829_v16 = vpop.f32.mrf.mxu2 }
  0xca   : > { %v3831_v17 = vpop.f32.mrf.mxu0  ;;  %v3833_v18 = vpop.f32.mrf.mxu3 }
  0xcb   : > { %v3835_v19 = vpop.f32.mrf.mxu1 }
  0xd1   : > { %v3842_v22 = vpop.f32.mrf.mxu2 }
  0xd2   : > { %v3844_v23 = vpop.f32.mrf.mxu0  ;;  %v3846_v24 = vpop.f32.mrf.mxu3 }
  0xd3   : > { %v3848_v25 = vpop.f32.mrf.mxu1 }
  0xd5   : > { %3368 = vmatmul.msk.bf16.gmra.mxu0 %vm786_vm2, %v3721_v34 }
  0xd6   : > { %3373 = vmatmul.msk.bf16.gmra.mxu1 %vm786_vm2, %v3721_v34  ;;  %3378 = vmatmul.msk.bf16.gmra.mxu2 %vm786_vm2, %v3721_v34 }
  0xd7   : > { %3383 = vmatmul.msk.bf16.gmra.mxu3 %vm786_vm2, %v3721_v34 }
  0xd9   : > { %v3861_v27 = vpop.f32.mrf.mxu2 }
  0xda   : > { %v581_v28 = vpop.f32.mrf.mxu0  ;;  %v3863_v29 = vpop.f32.mrf.mxu3 }
  0xdb   : > { %v614_v30 = vpop.f32.mrf.mxu1 }
  0xe1   : > { %v647_v32 = vpop.f32.mrf.mxu2 }
  0xe2   : > { %v680_v33 = vpop.f32.mrf.mxu3  ;;  %v3868_v35 = vpop.f32.mrf.mxu0 }
  0xe3   : > { %v3870_v36 = vpop.f32.mrf.mxu1 }
  0xe5   : > { %3369 = vmatmul.msk.bf16.gmra.mxu0 %vm786_vm2, %v3736_v45 }
  0xe6   : > { %3374 = vmatmul.msk.bf16.gmra.mxu1 %vm786_vm2, %v3736_v45  ;;  %3379 = vmatmul.msk.bf16.gmra.mxu2 %vm786_vm2, %v3736_v45 }
  0xe7   : > { %3384 = vmatmul.msk.bf16.gmra.mxu3 %vm786_vm2, %v3736_v45 }
  0xe9   : > { %v3880_v34 = vpop.f32.mrf.mxu2 }
  0xea   : > { %v3882_v37 = vpop.f32.mrf.mxu0  ;;  %v3884_v38 = vpop.f32.mrf.mxu3 }
  0xeb   : > { %v3886_v39 = vpop.f32.mrf.mxu1 }
  0xf1   : > { %v832_v40 = vpop.f32.mrf.mxu2 }
  0xf2   : > { %v833_v41 = vadd.f32 %v832_v40, %v3752_v53  ;;  %v3889_v42 = vpop.f32.mrf.mxu0  ;;  %v865_v43 = vpop.f32.mrf.mxu3 }
  0xf3   : > { %v3891_v46 = vpop.f32.mrf.mxu1  ;;  %v866_v47 = vadd.f32 %v865_v43, %v3756_v55  ;;  %v3937_v43 = vld [vmem:[%s5012_s11] sm:$0x3f] }
  0xf4   : > { %1096 = vrot.lane.b32.xlu0 %v833_v41, %s3542_s19 }
  0xf5   : > { %3370 = vmatmul.msk.bf16.gmra.mxu0 %vm786_vm2, %v3767_v61 }
  0xf6   : > { %3375 = vmatmul.msk.bf16.gmra.mxu1 %vm786_vm2, %v3767_v61  ;;  %3380 = vmatmul.msk.bf16.gmra.mxu2 %vm786_vm2, %v3767_v61 }
  0xf7   : > { %3385 = vmatmul.msk.bf16.gmra.mxu3 %vm786_vm2, %v3767_v61 }
  0xf9   : > { %v835_v45 = vpop.f32.mrf.mxu2 }
  0xfa   : > { %v836_v48 = vadd.f32 %v835_v45, %v3763_v59  ;;  %v3904_v49 = vpop.f32.mrf.mxu0  ;;  %v868_v51 = vpop.f32.mrf.mxu3 }
  0xfb   : > { %v3906_v53 = vpop.f32.mrf.mxu1  ;;  %v869_v56 = vadd.f32 %v868_v51, %v3769_v62 }
  0xfc   : > { %1145 = vrot.lane.b32.xlu2 %v836_v48, %s3541_s18  ;;  %1098 = vrot.lane.b32.xlu0 %v866_v47, %s3542_s19  ;;  %v1531_v48 = vperm.slane %v3937_v43, 1 }
 0x101   : > { %v837_v57 = vpop.f32.mrf.mxu2 }
 0x102   : > { %v3911_v20 = vpop.f32.mrf.mxu0  ;;  %v870_v61 = vpop.f32.mrf.mxu3  ;;  %v838_v26 = vadd.f32 %v837_v57, %v3779_v0 }
 0x103   : > { %v3913_v21 = vpop.f32.mrf.mxu1  ;;  %v871_v55 = vadd.f32 %v870_v61, %v3783_v2 }
 0x104   : > { %1147 = vrot.lane.b32.xlu0 %v869_v56, %s3541_s18  ;;  %1538 = vrot.lane.b32.xlu2 %v1531_v48, %s3545_s30 }
 0x105   : > { %1196 = vrot.lane.b32.xlu1 %v871_v55, %s3544_s25 }
 0x109   : > { %v840_v59 = vpop.f32.mrf.mxu2 }
 0x10a   : > { %v3919_v28 = vpop.f32.mrf.mxu0  ;;  %v873_v30 = vpop.f32.mrf.mxu3  ;;  %v841_v32 = vadd.f32 %v840_v59, %v3787_v4 }
 0x10b   : > { %v3921_v31 = vpop.f32.mrf.mxu1  ;;  %v874_v62 = vadd.f32 %v873_v30, %v3791_v6 }
 0x10c   : > { %1194 = vrot.lane.b32.xlu0 %v838_v26, %s3544_s25 }
 0x10d   : > { %1241 = vrot.lane.b32.xlu1 %v874_v62, %s3545_s30 }
 0x111   : > { %v842_v2 = vpop.f32.mrf.mxu2 }
 0x112   : > { %v3927_v33 = vpop.f32.mrf.mxu0  ;;  %v875_v40 = vpop.f32.mrf.mxu3  ;;  %v843_v4 = vadd.f32 %v842_v2, %v3803_v8 }
 0x113   : > { %v3929_v41 = vpop.f32.mrf.mxu1  ;;  %v876_v0 = vadd.f32 %v875_v40, %v3807_v10 }
 0x114   : > { %1239 = vrot.lane.b32.xlu0 %v841_v32, %s3545_s30 }
 0x115   : > { %1287 = vrot.lane.b32.xlu1 %v876_v0, %s3546_s13 }
 0x119   : > { %v845_v6 = vpop.f32.mrf.mxu2 }
 0x11a   : > { %v3940_v45 = vpop.f32.mrf.mxu0  ;;  %v878_v47 = vpop.f32.mrf.mxu3  ;;  %v846_v8 = vadd.f32 %v845_v6, %v3811_v12 }
 0x11b   : > { %v3943_v51 = vpop.f32.mrf.mxu1  ;;  %v879_v10 = vadd.f32 %v878_v47, %v3815_v14 }
 0x11c   : > { %1285 = vrot.lane.b32.xlu0 %v843_v4, %s3546_s13 }
 0x11d   : > { %1336 = vrot.lane.b32.xlu1 %v879_v10, %s3547_s16 }
 0x121   : > { %v847_v56 = vpop.f32.mrf.mxu2 }
 0x122   : > { %v3952_v57 = vpop.f32.mrf.mxu0  ;;  %v880_v61 = vpop.f32.mrf.mxu3  ;;  %v848_v26 = vadd.f32 %v847_v56, %v3831_v17  ;;  %v1532_v17 = vperm.slane %v3937_v43, 2 }
 0x123   : > { %v3954_v55 = vpop.f32.mrf.mxu1  ;;  %v881_v59 = vadd.f32 %v880_v61, %v3835_v19 }
 0x124   : > { %1334 = vrot.lane.b32.xlu0 %v846_v8, %s3547_s16 }
 0x125   : > { %1385 = vrot.lane.b32.xlu1 %v881_v59, %s3548_s17 }
 0x129   : > { %v850_v14 = vpop.f32.mrf.mxu2 }
 0x12a   : > { %v713_v30 = vpop.f32.mrf.mxu0  ;;  %v883_v62 = vpop.f32.mrf.mxu3  ;;  %v851_v19 = vadd.f32 %v850_v14, %v3844_v23 }
 0x12b   : > { %v746_v2 = vpop.f32.mrf.mxu1  ;;  %v884_v12 = vadd.f32 %v883_v62, %v3848_v25  ;;  %v1530_v62 = vperm.slane %v3937_v43, 0 }
 0x12c   : > { %1383 = vrot.lane.b32.xlu0 %v848_v26, %s3548_s17 }
 0x12d   : > { %1434 = vrot.lane.b32.xlu1 %v884_v12, %s3549_s20 }
 0x131   : > { %v852_v32 = vpop.f32.mrf.mxu2 }
 0x132   : > { %v885_v40 = vpop.f32.mrf.mxu3  ;;  %v3964_v0 = vpop.f32.mrf.mxu0 }
 0x133   : > { %v3966_v6 = vpop.f32.mrf.mxu1 }
 0x134   : > { %1432 = vrot.lane.b32.xlu0 %v851_v19, %s3549_s20 }
 0x139   : > { %v3970_v4 = vpop.f32.mrf.mxu2 }
 0x13a   : > { %v898_v25 = vpop.f32.mrf.mxu0  ;;  %v3972_v47 = vpop.f32.mrf.mxu3 }
 0x13b   : > { %v899_v10 = vadd.f32 %v898_v25, %v3761_v58  ;;  %v931_v56 = vpop.f32.mrf.mxu1 }
 0x13c   : > { %1540 = vrot.lane.b32.xlu0 %v1532_v17, %s3545_s30  ;;  %v932_v25 = vadd.f32 %v931_v56, %v3765_v60 }
 0x13d   : > { %1100 = vrot.lane.b32.xlu1 %v899_v10, %s3542_s19 }
 0x141   : > { %v964_v23 = vpop.f32.mrf.mxu2 }
 0x142   : > { %v965_v8 = vadd.f32 %v964_v23, %v3882_v37  ;;  %v901_v61 = vpop.f32.mrf.mxu0  ;;  %v3980_v59 = vpop.f32.mrf.mxu3 }
 0x143   : > { %v902_v14 = vadd.f32 %v901_v61, %v3777_v63  ;;  %v934_v26 = vpop.f32.mrf.mxu1 }
 0x144   : > { %v935_v30 = vadd.f32 %v934_v26, %v3781_v1  ;;  %1104 = vrot.lane.b32.xlu2 %v965_v8, %s3542_s19 }
 0x145   : > { %1149 = vrot.lane.b32.xlu1 %v902_v14, %s3541_s18 }
 0x146   : > { %1151 = vrot.lane.b32.xlu0 %v935_v30, %s3541_s18 }
 0x149   : > { %v967_v58 = vpop.f32.mrf.mxu2 }
 0x14a   : > { %v903_v2 = vpop.f32.mrf.mxu0  ;;  %v3988_v12 = vpop.f32.mrf.mxu3 }
 0x14b   : > { %v904_v37 = vadd.f32 %v903_v2, %v3785_v3  ;;  %v3991_v32 = vpop.f32.mrf.mxu1 }
 0x14d   : > { %1536 = vrot.lane.b32.xlu1 %v1530_v62, %s3545_s30  ;;  %1198 = vrot.lane.b32.xlu2 %v904_v37, %s3544_s25 }
 0x151   : > { %v969_v63 = vpop.f32.mrf.mxu2 }
 0x152   : > { %v970_v1 = vadd.f32 %v969_v63, %v3904_v49  ;;  %v906_v19 = vpop.f32.mrf.mxu0  ;;  %v3998_v40 = vpop.f32.mrf.mxu3  ;;  %v968_v49 = vadd.f32 %v967_v58, %v3889_v42 }
 0x153   : > { %v907_v10 = vadd.f32 %v906_v19, %v3801_v7  ;;  %v939_v23 = vpop.f32.mrf.mxu1  ;;  %v4012_v7 = vpop.permute.xlu0 %1470 }
 0x154   : > { %1202 = vrot.lane.b32.xlu0 %v970_v1, %s3544_s25  ;;  %v940_v37 = vadd.f32 %v939_v23, %v3805_v9  ;;  %v4021_v58 = vpop.permute.xlu1 %1094 }
 0x155   : > { %1102 = vrot.lane.b32.xlu1 %v932_v25, %s3542_s19  ;;  %1243 = vrot.lane.b32.xlu2 %v907_v10, %s3545_s30 }
 0x159   : > { %v4005_v3 = vpop.f32.mrf.mxu2 }
 0x15a   : > { %v908_v8 = vpop.f32.mrf.mxu0  ;;  %v4007_v61 = vpop.f32.mrf.mxu3 }
 0x15b   : > { %v909_v14 = vadd.f32 %v908_v8, %v3809_v11  ;;  %v941_v26 = vpop.f32.mrf.mxu1 }
 0x15c   : > { %v942_v60 = vadd.f32 %v941_v26, %v3813_v13  ;;  %v4035_v23 = vpop.permute.xlu1 %1505 }
 0x15d   : > { %1153 = vrot.lane.b32.xlu1 %v968_v49, %s3541_s18  ;;  %1289 = vrot.lane.b32.xlu2 %v909_v14, %s3546_s13  ;;  %v1144_v49 = vpop.permute.xlu2 %1143 }
 0x15e   : > { %1291 = vrot.lane.b32.xlu0 %v942_v60, %s3546_s13 }
 0x161   : > { %v974_v56 = vpop.f32.mrf.mxu2 }
 0x162   : > { %v911_v30 = vpop.f32.mrf.mxu0  ;;  %v4017_v2 = vpop.f32.mrf.mxu3  ;;  %v975_v10 = vadd.f32 %v974_v56, %v3919_v28 }
 0x163   : > { %v912_v42 = vadd.f32 %v911_v30, %v3829_v16  ;;  %v944_v11 = vpop.f32.mrf.mxu1 }
 0x165   : > { %1245 = vrot.lane.b32.xlu1 %v940_v37, %s3545_s30  ;;  %1338 = vrot.lane.b32.xlu2 %v912_v42, %s3547_s16  ;;  %v1193_v42 = vpop.permute.xlu2 %1192 }
 0x166   : > { %v4025_v13 = vpop.permute.xlu0 %1096 }
 0x169   : > { %v977_v63 = vpop.f32.mrf.mxu2 }
 0x16a   : > { %v978_v1 = vadd.f32 %v977_v63, %v3927_v33  ;;  %v913_v19 = vpop.f32.mrf.mxu0  ;;  %v4028_v25 = vpop.f32.mrf.mxu3  ;;  %v1534_v33 = vperm.slane %v3937_v43, 4 }
 0x16b   : > { %v914_v9 = vadd.f32 %v913_v19, %v3842_v22  ;;  %v946_v16 = vpop.f32.mrf.mxu1 }
 0x16c   : > { %1342 = vrot.lane.b32.xlu0 %v978_v1, %s3547_s16  ;;  %v947_v22 = vadd.f32 %v946_v16, %v3846_v24 }
 0x16d   : > { %1293 = vrot.lane.b32.xlu1 %v975_v10, %s3546_s13  ;;  %1387 = vrot.lane.b32.xlu2 %v914_v9, %s3548_s17 }
 0x16e   : > { %v4037_v8 = vpop.permute.xlu0 %1098 }
 0x171   : > { %v979_v14 = vpop.f32.mrf.mxu2 }
 0x172   : > { %v916_v26 = vpop.f32.mrf.mxu0  ;;  %v4040_v60 = vpop.f32.mrf.mxu3 }
 0x173   : > { %v917_v28 = vadd.f32 %v916_v26, %v3861_v27  ;;  %v949_v56 = vpop.f32.mrf.mxu1  ;;  %v937_v27 = vadd.f32 %v3991_v32, %v3789_v5  ;;  %v973_v5 = vadd.f32 %v4005_v3, %v3911_v20 }
 0x174   : > { %1544 = vrot.lane.b32.xlu0 %v1534_v33, %s3545_s30  ;;  %v950_v1 = vadd.f32 %v949_v56, %v3863_v29  ;;  %v4066_v56 = vpop.permute.xlu2 %1519 }
 0x175   : > { %1389 = vrot.lane.b32.xlu1 %v947_v22, %s3548_s17  ;;  %1436 = vrot.lane.b32.xlu2 %v917_v28, %s3549_s20  ;;  %v998_v28 = vadd.f32 %v3980_v59, %v3886_v39  ;;  %v980_v39 = vadd.f32 %v979_v14, %v3940_v45  ;;  %v1109_v45 = vsel %vm1108_vm3, %v4021_v58, %v4025_v13 }
 0x176   : > { %v4049_v30 = vpop.permute.xlu0 %1147 }
 0x177   : > { %v4051_v37 = vpop.permute.xlu1 %1196 }
 0x179   : > { %v982_v63 = vpop.f32.mrf.mxu2 }
 0x17a   : > { %v918_v24 = vpop.f32.mrf.mxu0  ;;  %v4054_v19 = vpop.f32.mrf.mxu3  ;;  %v983_v10 = vadd.f32 %v982_v63, %v3952_v57  ;;  %v945_v63 = vadd.f32 %v944_v11, %v3833_v18  ;;  %v1110_v18 = vsel %vm1108_vm3, %v4025_v13, %v4037_v8  ;;  %v831_v11 = vadd.f32 %v3880_v34, %v3731_v44 }
 0x17b   : > { %v951_v9 = vpop.f32.mrf.mxu1 }
 0x17c   : > { %1438 = vrot.lane.b32.xlu0 %v950_v1, %s3549_s20  ;;  %v1146_v1 = vpop.permute.xlu2 %1145  ;;  %v1123_v9 = vadd.f32 %v1110_v18, %v831_v11 }
 0x17d   : > { %1440 = vrot.lane.b32.xlu1 %v983_v10, %s3549_s20  ;;  %1200 = vrot.lane.b32.xlu2 %v937_v27, %s3544_s25  ;;  %v1533_v27 = vperm.slane %v3937_v43, 3  ;;  %v1159_v14 = vsel %vm1157_vm4, %v1146_v1, %v4049_v30  ;;  %v1158_v10 = vsel %vm1157_vm4, %v1144_v49, %v1146_v1 }
 0x17e   : > { %v1195_v16 = vpop.permute.xlu0 %1194  ;;  %v1171_v34 = vadd.f32 %v1158_v10, %v1109_v45 }
 0x17f   : > { %v4062_v26 = vpop.permute.xlu1 %1241  ;;  %v1208_v58 = vsel %vm1206_vm5, %v1195_v16, %v4051_v37 }
 0x181   : > { %v984_v22 = vpop.f32.mrf.mxu2 }
 0x182   : > { %v1017_v29 = vpop.f32.mrf.mxu3  ;;  %v1207_v22 = vsel %vm1206_vm5, %v1193_v42, %v1195_v16 }
 0x184   : > { %v4080_v20 = vpop.permute.xlu2 %1538 }
 0x185   : > { %1106 = vrot.lane.b32.xlu1 %v998_v28, %s3542_s19  ;;  %1247 = vrot.lane.b32.xlu2 %v973_v5, %s3545_s30  ;;  %v1172_v28 = vadd.f32 %v1159_v14, %v1123_v9  ;;  %v1220_v5 = vadd.f32 %v1207_v22, %v1171_v34  ;;  %s3550_s19 = smov 37  }
 0x186   : > { %v1240_v57 = vpop.permute.xlu0 %1239 }
 0x187   : > { %v4072_v32 = vpop.permute.xlu1 %1287  ;;  %v1221_v49 = vadd.f32 %v1208_v58, %v1172_v28  ;;  %v1264_v1 = vadd.f32 %v1240_v57, %v1220_v5 }
 0x18d   : > { %1340 = vrot.lane.b32.xlu2 %v945_v63, %s3547_s16  ;;  %v1252_v63 = vsel %vm1251_vm6, %v1240_v57, %v4062_v26 }
 0x18e   : > { %v1286_v24 = vpop.permute.xlu0 %1285 }
 0x18f   : > { %v4077_v59 = vpop.permute.xlu1 %1336  ;;  %v1300_v42 = vsel %vm1299_vm7, %v1286_v24, %v4072_v32  ;;  %v1313_v18 = vadd.f32 %v1286_v24, %v1264_v1 }
 0x195   : > { %1391 = vrot.lane.b32.xlu2 %v980_v39, %s3548_s17  ;;  %v1265_v39 = vadd.f32 %v1252_v63, %v1221_v49 }
 0x196   : > { %v1335_v3 = vpop.permute.xlu0 %1334 }
 0x197   : > { %v4098_v29 = vpop.permute.xlu1 %1385  ;;  %v1349_v16 = vsel %vm1348_vm8, %v1335_v3, %v4077_v59  ;;  %v1314_v11 = vadd.f32 %v1300_v42, %v1265_v39  ;;  %v1362_v10 = vadd.f32 %v1335_v3, %v1313_v18 }
 0x199   : > { %v1363_v57 = vadd.f32 %v1349_v16, %v1314_v11 }
 0x19d   : > { %1542 = vrot.lane.b32.xlu2 %v1533_v27, %s3545_s30 }
 0x19e   : > { %v1384_v44 = vpop.permute.xlu0 %1383  ;;  %v4102_v13 = vpop.permute.xlu2 %1104 }
 0x19f   : > { %v4110_v45 = vpop.permute.xlu1 %1434  ;;  %v1398_v9 = vsel %vm1397_vm9, %v1384_v44, %v4098_v29  ;;  %v1411_v34 = vadd.f32 %v1384_v44, %v1362_v10  ;;  %v864_v10 = vadd.f32 %v3884_v38, %v3741_v50 }
 0x1a0   : > { %v1412_v24 = vadd.f32 %v1398_v9, %v1363_v57 }
 0x1a6   : > { %v1433_v14 = vpop.permute.xlu0 %1432 }
 0x1a7   : > { %v4114_v22 = vpop.permute.xlu2 %1198  ;;  %v1447_v58 = vsel %vm1446_vm10, %v1433_v14, %v4110_v45  ;;  %v1460_v28 = vadd.f32 %v1433_v14, %v1411_v34 }
 0x1a8   : > { %v1461_v5 = vadd.f32 %v1447_v58, %v1412_v24  ;;  %v1209_v50 = vsel %vm1206_vm5, %v4051_v37, %v4114_v22 }
 0x1a9   : > { %v1473_v63 = vadd.f32 %v4012_v7, %v1460_v28 }
 0x1aa   : > { %v1474_v3 = vadd.f32 %v4012_v7, %v1461_v5 }
 0x1ab   : > { %v1487_v42 = vmul.f32 0.01, %v1473_v63  ;;  %vm1480_vm11 = vcmp.ge.f32.partialorder %v1473_v63, 0.0 }
 0x1ac   : > { %v1488_v39 = vmul.f32 0.01, %v1474_v3  ;;  %vm1481_vm12 = vcmp.ge.f32.partialorder %v1474_v3, 0.0 }
 0x1ad   : > { %v1494_v16 = vsel %vm1480_vm11, %v1473_v63, %v1487_v42  ;;  %vm2289_vm11 = vcmask 883712  }
 0x1ae   : > { %v1495_v14 = vsel %vm1481_vm12, %v1474_v3, %v1488_v39  ;;  %v1508_v57 = vmul.f32 %v4035_v23, %v1494_v16  ;;  %v4135_v28 = vpop.permute.xlu0 %1540  ;;  %vm2142_vm12 = vcmask 424960  }
 0x1af   : > { %v1101_v49 = vpop.permute.xlu1 %1100  ;;  %v4119_v1 = vpop.permute.xlu2 %1243  ;;  %v1509_v58 = vmul.f32 %v4035_v23, %v1495_v14 }
 0x1b0   : > { %v1111_v11 = vsel %vm1108_vm3, %v4037_v8, %v1101_v49  ;;  %v1522_v5 = vadd.f32 %v4066_v56, %v1508_v57  ;;  %v1253_v14 = vsel %vm1251_vm6, %v4062_v26, %v4119_v1 }
 0x1b1   : > { %v1124_v34 = vadd.f32 %v1111_v11, %v864_v10  ;;  %v1523_v8 = vadd.f32 %v4066_v56, %v1509_v58 }
 0x1b7   : > { %v4122_v18 = vpop.permute.xlu1 %1149  ;;  %v4124_v44 = vpop.permute.xlu2 %1289 }
 0x1b8   : > { %v1160_v9 = vsel %vm1157_vm4, %v4049_v30, %v4122_v18 }
 0x1b9   : > { %v1173_v24 = vadd.f32 %v1160_v9, %v1124_v34  ;;  %v1152_v9 = vpop.permute.xlu0 %1151  ;;  %v1301_v34 = vsel %vm1299_vm7, %v4072_v32, %v4124_v44 }
 0x1bb   : > { %v1222_v42 = vadd.f32 %v1209_v50, %v1173_v24  ;;  %v1006_v24 = vadd.f32 %v4007_v61, %v3913_v21 }
 0x1bd   : > { %v1266_v10 = vadd.f32 %v1253_v14, %v1222_v42  ;;  %v1549_v14 = vsel %vm1251_vm6, %v4080_v20, %v4135_v28 }
 0x1bf   : > { %v1537_v63 = vpop.permute.xlu1 %1536  ;;  %v4139_v3 = vpop.permute.xlu2 %1338  ;;  %v1315_v58 = vadd.f32 %v1301_v34, %v1266_v10 }
 0x1c0   : > { %v1548_v38 = vsel %vm1251_vm6, %v1537_v63, %v4080_v20  ;;  %v1560_v30 = vmul.f32 %v1537_v63, %v1522_v5  ;;  %v1350_v26 = vsel %vm1348_vm8, %v4077_v59, %v4139_v3  ;;  %v1001_v5 = vadd.f32 %v3988_v12, %v3891_v46 }
 0x1c1   : > { %v1561_v39 = vmul.f32 %v1548_v38, %v1523_v8  ;;  %v1364_v8 = vadd.f32 %v1350_v26, %v1315_v58  ;;  %v1011_v59 = vadd.f32 %v4028_v25, %v3929_v41  ;;  %v897_v41 = vadd.f32 %v3964_v0, %v3750_v52 }
 0x1c2   : > { %v1576_v16 = vpack.c.bf16 %v1560_v30, %v1560_v30 }
 0x1c3   : > { %v1577_v11 = vpack.c.bf16 %v1561_v39, %v1561_v39 }
 0x1c4   : > { %1613 = vrot.lane.b32.xlu1 %v1576_v16, %s3550_s19 }
 0x1c5   : > { %1615 = vrot.lane.b32.xlu2 %v1577_v11, %s3550_s19 }
 0x1c6   : > { %v4168_v32 = vpop.permute.xlu0 %1202 }
 0x1c7   : > { %v1103_v37 = vpop.permute.xlu1 %1102  ;;  %v4151_v57 = vpop.permute.xlu2 %1387 }
 0x1c8   : > { %v1399_v63 = vsel %vm1397_vm9, %v4098_v29, %v4151_v57  ;;  %v1008_v29 = vadd.f32 %v4017_v2, %v3921_v31  ;;  %v1112_v39 = vsel %vm1108_vm3, %v1101_v49, %v1103_v37  ;;  %v1161_v49 = vsel %vm1157_vm4, %v4122_v18, %v1152_v9 }
 0x1c9   : > { %v1413_v50 = vadd.f32 %v1399_v63, %v1364_v8  ;;  %v1125_v31 = vadd.f32 %v1112_v39, %v897_v41  ;;  %v1113_v26 = vsel %vm1108_vm3, %v1103_v37, %v4102_v13  ;;  %v1535_v18 = vperm.slane %v3937_v43, 5 }
 0x1ca   : > { %v1016_v8 = vadd.f32 %v4054_v19, %v3954_v55 }
 0x1cb   : > { %v1174_v52 = vadd.f32 %v1161_v49, %v1125_v31 }
 0x1cc   : > { %1249 = vrot.lane.b32.xlu1 %v1006_v24, %s3545_s30 }
 0x1cd   : > { %1155 = vrot.lane.b32.xlu2 %v1001_v5, %s3541_s18 }
 0x1cf   : > { %v4170_v21 = vpop.permute.xlu1 %1153  ;;  %v4172_v61 = vpop.permute.xlu2 %1436 }
 0x1d0   : > { %v1448_v46 = vsel %vm1446_vm10, %v4110_v45, %v4172_v61  ;;  %v1292_v42 = vpop.permute.xlu0 %1291  ;;  %v1162_v63 = vsel %vm1157_vm4, %v1152_v9, %v4170_v21 }
 0x1d1   : > { %v1462_v12 = vadd.f32 %v1448_v46, %v1413_v50  ;;  %v1302_v19 = vsel %vm1299_vm7, %v4124_v44, %v1292_v42 }
 0x1d3   : > { %v1475_v38 = vadd.f32 %v4012_v7, %v1462_v12 }
 0x1d4   : > { %1344 = vrot.lane.b32.xlu1 %v1011_v59, %s3547_s16 }
 0x1d5   : > { %vm1482_vm13 = vcmp.ge.f32.partialorder %v1475_v38, 0.0  ;;  %v1489_v30 = vmul.f32 0.01, %v1475_v38  ;;  %1295 = vrot.lane.b32.xlu2 %v1008_v29, %s3546_s13 }
 0x1d7   : > { %v1496_v16 = vsel %vm1482_vm13, %v1475_v38, %v1489_v30  ;;  %v1246_v45 = vpop.permute.xlu1 %1245  ;;  %v1201_v11 = vpop.permute.xlu2 %1200 }
 0x1d8   : > { %v1510_v25 = vmul.f32 %v4035_v23, %v1496_v16  ;;  %v1210_v34 = vsel %vm1206_vm5, %v4114_v22, %v1201_v11  ;;  %v930_v22 = vadd.f32 %v3966_v6, %v3754_v54  ;;  %v1254_v46 = vsel %vm1251_vm6, %v4119_v1, %v1246_v45 }
 0x1d9   : > { %v1223_v5 = vadd.f32 %v1210_v34, %v1174_v52  ;;  %v1211_v37 = vsel %vm1206_vm5, %v1201_v11, %v4168_v32  ;;  %v1003_v54 = vadd.f32 %v3998_v40, %v3906_v53 }
 0x1da   : > { %v1524_v2 = vadd.f32 %v4066_v56, %v1510_v25  ;;  %v1126_v50 = vadd.f32 %v1113_v26, %v930_v22 }
 0x1db   : > { %v1267_v12 = vadd.f32 %v1254_v46, %v1223_v5 }
 0x1dc   : > { %1395 = vrot.lane.b32.xlu1 %v3540_v15, %s3548_s17  ;;  %v1562_v10 = vmul.f32 %v1549_v14, %v1524_v2  ;;  %v1175_v59 = vadd.f32 %v1162_v63, %v1126_v50 }
 0x1dd   : > { %1346 = vrot.lane.b32.xlu2 %v3540_v15, %s3547_s16  ;;  %v1316_v38 = vadd.f32 %v1302_v19, %v1267_v12 }
 0x1de   : > { %v4200_v0 = vpop.permute.xlu0 %1342  ;;  %v1578_v58 = vpack.c.bf16 %v1562_v10, %v1562_v10  ;;  %v1224_v1 = vadd.f32 %v1211_v37, %v1175_v59 }
 0x1df   : > { %v4202_v24 = vpop.permute.xlu1 %1293  ;;  %v4204_v20 = vpop.permute.xlu2 %1247 }
 0x1e0   : > { %1617 = vrot.lane.b32.xlu0 %v1578_v58, %s3550_s19  ;;  %v1255_v55 = vsel %vm1251_vm6, %v1246_v45, %v4204_v20  ;;  %v1303_v53 = vsel %vm1299_vm7, %v1292_v42, %v4202_v24  ;;  %v1013_v58 = vadd.f32 %v4040_v60, %v3943_v51 }
 0x1e1   : > { %v1268_v39 = vadd.f32 %v1255_v55, %v1224_v1  ;;  %v2310_v55 = vld [vmem:[%s5009_s8] sm:$0xff] }
 0x1e3   : > { %v1317_v45 = vadd.f32 %v1303_v53, %v1268_v39  ;;  %v4285_v39 = vld [vmem:[%s5005_s4] sm:$0xff]  ;;  %v4293_v53 = vld [vmem:[%s5005_s4 + $0x8] sm:$0xff] }
 0x1e4   : > { %1546 = vrot.lane.b32.xlu1 %v1535_v18, %s3545_s30  ;;  %s3552_s30 = smov 52  }
 0x1e5   : > { %1442 = vrot.lane.b32.xlu2 %v1016_v8, %s3549_s20 }
 0x1e6   : > { %v4228_v6 = vpop.permute.xlu0 %1544 }
 0x1e7   : > { %v1390_v9 = vpop.permute.xlu1 %1389  ;;  %v1341_v29 = vpop.permute.xlu2 %1340 }
 0x1e8   : > { %v1351_v30 = vsel %vm1348_vm8, %v4139_v3, %v1341_v29  ;;  %1204 = vrot.lane.b32.xlu0 %v1003_v54, %s3544_s25  ;;  %v1352_v40 = vsel %vm1348_vm8, %v1341_v29, %v4200_v0  ;;  %v1400_v44 = vsel %vm1397_vm9, %v4151_v57, %v1390_v9  ;;  %s3551_s25 = smov 124  }
 0x1e9   : > { %v1365_v16 = vadd.f32 %v1351_v30, %v1316_v38  ;;  %v1366_v25 = vadd.f32 %v1352_v40, %v1317_v45 }
 0x1eb   : > { %v1414_v11 = vadd.f32 %v1400_v44, %v1365_v16 }
 0x1ee   : > { %v1439_v41 = vpop.permute.xlu0 %1438 }
 0x1ef   : > { %v1449_v3 = vsel %vm1446_vm10, %v4172_v61, %v1439_v41  ;;  %v4243_v31 = vpop.permute.xlu1 %1440  ;;  %v4245_v2 = vpop.permute.xlu2 %1391 }
 0x1f0   : > { %v1463_v14 = vadd.f32 %v1449_v3, %v1414_v11  ;;  %v1401_v42 = vsel %vm1397_vm9, %v1390_v9, %v4245_v2  ;;  %1297 = vrot.lane.b32.xlu0 %v3540_v15, %s3546_s13  ;;  %v1450_v49 = vsel %vm1446_vm10, %v1439_v41, %v4243_v31  ;;  %v963_v3 = vadd.f32 %v3970_v4, %v3868_v35  ;;  %s3553_s13 = smov 112  }
 0x1f1   : > { %v1415_v10 = vadd.f32 %v1401_v42, %v1366_v25 }
 0x1f2   : > { %v1476_v57 = vadd.f32 %v4012_v7, %v1463_v14  ;;  %v4309_v14 = vld [vmem:[%s5005_s4 + $0x10] sm:$0xff] }
 0x1f3   : > { %v1464_v34 = vadd.f32 %v1450_v49, %v1415_v10 }
 0x1f4   : > { %vm1483_vm14 = vcmp.ge.f32.partialorder %v1476_v57, 0.0  ;;  %v1490_v61 = vmul.f32 0.01, %v1476_v57 }
 0x1f5   : > { %v1477_v52 = vadd.f32 %v4012_v7, %v1464_v34 }
 0x1f6   : > { %v1497_v26 = vsel %vm1483_vm14, %v1476_v57, %v1490_v61 }
 0x1f7   : > { %v1491_v5 = vmul.f32 0.01, %v1477_v52  ;;  %v1543_v22 = vpop.permute.xlu2 %1542  ;;  %vm1484_vm15 = vcmp.ge.f32.partialorder %v1477_v52, 0.0  ;;  %v1511_v63 = vmul.f32 %v4035_v23, %v1497_v26  ;;  %v1107_v1 = vpop.permute.xlu1 %1106 }
 0x1f8   : > { %v1550_v8 = vsel %vm1251_vm6, %v4135_v28, %v1543_v22  ;;  %1393 = vrot.lane.b32.xlu0 %v1013_v58, %s3548_s17  ;;  %v1551_v60 = vsel %vm1251_vm6, %v1543_v22, %v4228_v6  ;;  %v1114_v41 = vsel %vm1108_vm3, %v4102_v13, %v1107_v1  ;;  %s3556_s17 = smov 74  }
 0x1f9   : > { %v1498_v50 = vsel %vm1484_vm15, %v1477_v52, %v1491_v5  ;;  %v1525_v46 = vadd.f32 %v4066_v56, %v1511_v63  ;;  %v1127_v57 = vadd.f32 %v1114_v41, %v963_v3 }
 0x1fa   : > { %v1512_v37 = vmul.f32 %v4035_v23, %v1498_v50 }
 0x1fb   : > { %v1563_v12 = vmul.f32 %v1550_v8, %v1525_v46  ;;  %v4335_v46 = vld [vmem:[%s5005_s4 + $0x18] sm:$0xff] }
 0x1fc   : > { %v1526_v51 = vadd.f32 %v4066_v56, %v1512_v37 }
 0x1fd   : > { %v1579_v59 = vpack.c.bf16 %v1563_v12, %v1563_v12 }
 0x1fe   : > { %v1564_v28 = vmul.f32 %v1551_v60, %v1526_v51 }
 0x1ff   : > { %1619 = vrot.lane.b32.xlu2 %v1579_v59, %s3550_s19 }
 0x200   : > { %1444 = vrot.lane.b32.xlu0 %v3540_v15, %s3549_s20  ;;  %v1580_v54 = vpack.c.bf16 %v1564_v28, %v1564_v28 }
 0x208   : > { %1621 = vrot.lane.b32.xlu0 %v1580_v54, %s3550_s19 }
 0x210   : > { %1940 = vrot.lane.b32.xlu0 %v3540_v15, %s3541_s18 }
 0x218   : > { %2313 = vperm.xlu0 %3529, %v2310_v55  }
 0x21f   : > { %v1616_v19 = vpop.permute.xlu2 %1615 }
 0x220   : > { %2372 = vrot.lane.b32.xlu0 %v1530_v62, %s3549_s20 }
 0x227   : > { %v1156_v9 = vpop.permute.xlu2 %1155 }
 0x228   : > { %v1163_v42 = vsel %vm1157_vm4, %v4170_v21, %v1156_v9  ;;  %v996_v21 = vadd.f32 %v3972_v47, %v3870_v36 }
 0x229   : > { %v1176_v4 = vadd.f32 %v1163_v42, %v1127_v57 }
 0x22a   : > { %v1128_v26 = vadd.f32 %v1107_v1, %v996_v21 }
 0x22c   : > { %v1177_v22 = vadd.f32 %v1156_v9, %v1128_v26 }
 0x22f   : > { %v1296_v62 = vpop.permute.xlu2 %1295 }
 0x230   : > { %v1304_v63 = vsel %vm1299_vm7, %v4202_v24, %v1296_v62 }
 0x236   : > { %v1614_v29 = vpop.permute.xlu1 %1613 }
 0x237   : > { %v1628_v38 = vsel %vm1627_vm0, %v1614_v29, %v1616_v19  ;;  %v1347_v16 = vpop.permute.xlu2 %1346 }
 0x238   : > { %v4280_v30 = vsel %vm802_vm1, %v1628_v38, 0 }
 0x239   : > { %1674 = vmatpush.bf16.msrb.mxu0 %v4280_v30 }
 0x23c   : > { %3404 = vmatmul.msk.bf16.vlgmr.msrb.gmra.mxu0 %vm786_vm2, %v4285_v39 }
 0x23e   : > { %v1250_v25 = vpop.permute.xlu1 %1249 }
 0x23f   : > { %v1443_v40 = vpop.permute.xlu2 %1442  ;;  %v1256_v52 = vsel %vm1251_vm6, %v4204_v20, %v1250_v25 }
 0x240   : > { %v1451_v28 = vsel %vm1446_vm10, %v4243_v31, %v1443_v40 }
 0x246   : > { %v1345_v58 = vpop.permute.xlu1 %1344 }
 0x247   : > { %v1353_v36 = vsel %vm1348_vm8, %v4200_v0, %v1345_v58  ;;  %v1354_v0 = vsel %vm1348_vm8, %v1345_v58, %v1347_v16 }
 0x24c   : > { %3405 = vmatmul.msk.bf16.gmra.mxu0 %vm786_vm2, %v4293_v53 }
 0x24e   : > { %v1396_v59 = vpop.permute.xlu1 %1395 }
 0x252   : > { %v1618_v44 = vpop.permute.xlu0 %1617 }
 0x253   : > { %v1629_v45 = vsel %vm1627_vm0, %v1616_v19, %v1618_v44 }
 0x254   : > { %v4299_v11 = vsel %vm802_vm1, %v1629_v45, 0 }
 0x255   : > { %1707 = vmatpush.bf16.msrb.mxu1 %v4299_v11 }
 0x256   : > { %v1547_v45 = vpop.permute.xlu1 %1546 }
 0x257   : > { %v1552_v42 = vsel %vm1251_vm6, %v4228_v6, %v1547_v45  ;;  %vm2002_vm6 = vcmask 1014784  }
 0x258   : > { %3409 = vmatmul.msk.bf16.vlgmr.msrb.gmra.mxu1 %vm786_vm2, %v4285_v39 }
 0x259   : > { %v1620_v10 = vpop.permute.xlu2 %1619 }
 0x25a   : > { %v1630_v49 = vsel %vm1627_vm0, %v1618_v44, %v1620_v10  ;;  %v1205_v13 = vpop.permute.xlu0 %1204 }
 0x25b   : > { %v4317_v34 = vsel %vm802_vm1, %v1630_v49, 0  ;;  %v1212_v35 = vsel %vm1206_vm5, %v4168_v32, %v1205_v13  ;;  %v1226_v8 = vadd.f32 %v1205_v13, %v1177_v22 }
 0x25c   : > { %1740 = vmatpush.bf16.msrb.mxu2 %v4317_v34  ;;  %3406 = vmatmul.msk.bf16.gmra.mxu0 %vm786_vm2, %v4309_v14  ;;  %v1225_v61 = vadd.f32 %v1212_v35, %v1176_v4 }
 0x25d   : > { %v1270_v20 = vadd.f32 %v1250_v25, %v1226_v8 }
 0x25e   : > { %v1269_v5 = vadd.f32 %v1256_v52, %v1225_v61 }
 0x25f   : > { %3414 = vmatmul.msk.bf16.vlgmr.msrb.gmra.mxu2 %vm786_vm2, %v4285_v39 }
 0x260   : > { %v1318_v50 = vadd.f32 %v1304_v63, %v1269_v5 }
 0x262   : > { %v1298_v32 = vpop.permute.xlu0 %1297  ;;  %v1367_v12 = vadd.f32 %v1353_v36, %v1318_v50 }
 0x263   : > { %v1305_v47 = vsel %vm1299_vm7, %v1296_v62, %v1298_v32  ;;  %vm2191_vm7 = vcmask 916480  }
 0x264   : > { %v1319_v51 = vadd.f32 %v1305_v47, %v1270_v20 }
 0x266   : > { %v1368_v19 = vadd.f32 %v1354_v0, %v1319_v51 }
 0x268   : > { %3410 = vmatmul.msk.bf16.gmra.mxu1 %vm786_vm2, %v4293_v53 }
 0x26a   : > { %v1394_v37 = vpop.permute.xlu0 %1393 }
 0x26b   : > { %v1402_v24 = vsel %vm1397_vm9, %v4245_v2, %v1394_v37  ;;  %v1403_v55 = vsel %vm1397_vm9, %v1394_v37, %v1396_v59  ;;  %v1575_v2 = vld [vmem:[%s5005_s4 + $0x20] sm:$0xf]  ;;  %vm2240_vm9 = vcmask 900096  }
 0x26c   : > { %v1416_v60 = vadd.f32 %v1402_v24, %v1367_v12  ;;  %3407 = vmatmul.msk.bf16.gmra.mxu0 %vm786_vm2, %v4335_v46  ;;  %v1417_v9 = vadd.f32 %v1403_v55, %v1368_v19  ;;  %v1600_v44 = vunpack.c.l.b16 %v1575_v2 }
 0x26e   : > { %v1465_v54 = vadd.f32 %v1451_v28, %v1416_v60  ;;  %v4362_v49 = vpack.c.b16 %v1600_v44, %v1600_v44 }
 0x26f   : > { %3415 = vmatmul.msk.bf16.gmra.mxu2 %vm786_vm2, %v4293_v53 }
 0x270   : > { %v1478_v1 = vadd.f32 %v4012_v7, %v1465_v54 }
 0x272   : > { %vm1485_vm3 = vcmp.ge.f32.partialorder %v1478_v1, 0.0  ;;  %v1492_v29 = vmul.f32 0.01, %v1478_v1  ;;  %v1445_v38 = vpop.permute.xlu0 %1444 }
 0x273   : > { %v1452_v31 = vsel %vm1446_vm10, %v1443_v40, %v1445_v38 }
 0x274   : > { %v1466_v62 = vadd.f32 %v1452_v31, %v1417_v9  ;;  %v1499_v16 = vsel %vm1485_vm3, %v1478_v1, %v1492_v29 }
 0x275   : > { %v1513_v41 = vmul.f32 %v4035_v23, %v1499_v16 }
 0x276   : > { %v1479_v25 = vadd.f32 %v4012_v7, %v1466_v62 }
 0x277   : > { %v1527_v3 = vadd.f32 %v4066_v56, %v1513_v41 }
 0x278   : > { %vm1486_vm5 = vcmp.ge.f32.partialorder %v1479_v25, 0.0  ;;  %v1493_v57 = vmul.f32 0.01, %v1479_v25  ;;  %3411 = vmatmul.msk.bf16.gmra.mxu1 %vm786_vm2, %v4309_v14 }
 0x279   : > { %v1565_v40 = vmul.f32 %v1552_v42, %v1527_v3 }
 0x27a   : > { %v1500_v13 = vsel %vm1486_vm5, %v1479_v25, %v1493_v57  ;;  %v1622_v35 = vpop.permute.xlu0 %1621 }
 0x27b   : > { %v1631_v4 = vsel %vm1627_vm0, %v1620_v10, %v1622_v35  ;;  %v1581_v61 = vpack.c.bf16 %v1565_v40, %v1565_v40  ;;  %v1514_v7 = vmul.f32 %v4035_v23, %v1500_v13  ;;  %v3435_v10 = vld [vmem:[%s5009_s8 + $0x10] sm:$0xff] }
 0x27c   : > { %v4369_v21 = vsel %vm802_vm1, %v1631_v4, 0  ;;  %3408 = vmatmul.msk.bf16.gmra.mxu0 %vm786_vm2, %v4362_v49 }
 0x27d   : > { %1623 = vrot.lane.b32.xlu1 %v1581_v61, %s3550_s19  ;;  %1773 = vmatpush.bf16.msrb.mxu3 %v4369_v21  ;;  %v1528_v6 = vadd.f32 %v4066_v56, %v1514_v7  ;;  %v3434_v56 = vld [vmem:[%s5009_s8 + $0x8] sm:$0xff] }
 0x27f   : > { %v1566_v52 = vmul.f32 %v1547_v45, %v1528_v6  ;;  %3416 = vmatmul.msk.bf16.gmra.mxu2 %vm786_vm2, %v4309_v14 }
 0x280   : > { %3419 = vmatmul.msk.bf16.vlgmr.msrb.gmra.mxu3 %vm786_vm2, %v4285_v39 }
 0x281   : > { %v1582_v23 = vpack.c.bf16 %v1566_v52, %v1566_v52 }
 0x282   : > { %v4455_v19 = vpop.permute.xlu0 %1940 }
 0x283   : > { %1625 = vrot.lane.b32.xlu2 %v1582_v23, %s3550_s19 }
 0x285   : > { %1988 = vrot.lane.b32.xlu1 %v3540_v15, %s3551_s25 }
 0x288   : > { %3412 = vmatmul.msk.bf16.gmra.mxu1 %vm786_vm2, %v4335_v46 }
 0x28a   : > { %v4463_v2 = vpop.permute.xlu0 %2313 }
 0x28b   : > { %2037 = vrot.lane.b32.xlu2 %v3540_v15, %s3547_s16 }
 0x28d   : > { %2348 = vperm.xlu1 %3530, %v3434_v56  }
 0x28f   : > { %3417 = vmatmul.msk.bf16.gmra.mxu2 %vm786_vm2, %v4335_v46 }
 0x290   : > { %3420 = vmatmul.msk.bf16.gmra.mxu3 %vm786_vm2, %v4293_v53 }
 0x292   : > { %v4465_v9 = vpop.permute.xlu0 %2372 }
 0x293   : > { %2362 = vperm.xlu2 %3531, %v3435_v10  }
 0x295   : > { %2374 = vrot.lane.b32.xlu1 %v1531_v48, %s3549_s20 }
 0x298   : > { %3413 = vmatmul.msk.bf16.gmra.mxu1 %vm786_vm2, %v4362_v49 }
 0x29b   : > { %2376 = vrot.lane.b32.xlu2 %v1532_v17, %s3549_s20 }
 0x29f   : > { %3418 = vmatmul.msk.bf16.gmra.mxu2 %vm786_vm2, %v4362_v49 }
 0x2a0   : > { %3421 = vmatmul.msk.bf16.gmra.mxu3 %vm786_vm2, %v4309_v14 }
 0x2b0   : > { %3422 = vmatmul.msk.bf16.gmra.mxu3 %vm786_vm2, %v4335_v46 }
 0x2b9   : > { %v4411_v58 = vpop.f32.mrf.mxu0 }
 0x2c0   : > { %3423 = vmatmul.msk.bf16.gmra.mxu3 %vm786_vm2, %v4362_v49 }
 0x2c1   : > { %v1678_v48 = vpop.f32.mrf.mxu0 }
 0x2c2   : > { %1942 = vrot.lane.b32.xlu0 %v1678_v48, %s3541_s18 }
 0x2c9   : > { %v1681_v26 = vpop.f32.mrf.mxu0 }
 0x2ca   : > { %1990 = vrot.lane.b32.xlu2 %v1681_v26, %s3551_s25 }
 0x2d1   : > { %v1683_v17 = vpop.f32.mrf.mxu0 }
 0x2d2   : > { %2039 = vrot.lane.b32.xlu0 %v1683_v17, %s3547_s16 }
 0x2d5   : > { %v4419_v32 = vpop.f32.mrf.mxu1 }
 0x2d9   : > { %v1686_v5 = vpop.f32.mrf.mxu0 }
 0x2da   : > { %2083 = vrot.lane.b32.xlu0 %v1686_v5, %s3549_s20 }
 0x2dd   : > { %v1711_v63 = vpop.f32.mrf.mxu1  ;;  %v1626_v50 = vpop.permute.xlu2 %1625 }
 0x2e1   : > { %v1688_v22 = vpop.f32.mrf.mxu0 }
 0x2e2   : > { %2128 = vrot.lane.b32.xlu0 %v1688_v22, %s3552_s30  ;;  %v4437_v51 = vpop.f32.mrf.mxu2 }
 0x2e5   : > { %v1714_v37 = vpop.f32.mrf.mxu1  ;;  %v4484_v25 = vpop.permute.xlu2 %2037 }
 0x2e9   : > { %v1691_v8 = vpop.f32.mrf.mxu0 }
 0x2ea   : > { %2177 = vrot.lane.b32.xlu0 %v1691_v8, %s3553_s13  ;;  %v1744_v28 = vpop.f32.mrf.mxu2 }
 0x2ef   : > { %v1624_v36 = vpop.permute.xlu1 %1623 }
 0x2f0   : > { %v1632_v47 = vsel %vm1627_vm0, %v1622_v35, %v1624_v36  ;;  %v1633_v20 = vsel %vm1627_vm0, %v1624_v36, %v1626_v50 }
 0x2f1   : > { %v4426_v12 = vsel %vm802_vm1, %v1632_v47, 0  ;;  %v4429_v59 = vsel %vm802_vm1, %v1633_v20, 0  ;;  %v1693_v24 = vpop.f32.mrf.mxu0 }
 0x2f2   : > { %2226 = vrot.lane.b32.xlu1 %v1693_v24, %s3554_s14  ;;  %1806 = vmatpush.bf16.msra.mxu0 %v4426_v12  ;;  %v1747_v16 = vpop.f32.mrf.mxu2 }
 0x2f3   : > { %1839 = vmatpush.bf16.msra.mxu1 %v4429_v59  ;;  %1992 = vrot.lane.b32.xlu0 %v1714_v37, %s3551_s25 }
 0x2f5   : > { %3424 = vmatmul.msk.bf16.vlgmr.msra.gmra.mxu0 %vm786_vm2, %v4285_v39 }
 0x2f6   : > { %3429 = vmatmul.msk.bf16.vlgmr.msra.gmra.mxu1 %vm786_vm2, %v4285_v39  ;;  %v1716_v39 = vpop.f32.mrf.mxu1 }
 0x2f7   : > { %v4480_v44 = vpop.permute.xlu1 %1988 }
 0x2f9   : > { %v1696_v60 = vpop.f32.mrf.mxu0 }
 0x2fa   : > { %1944 = vrot.lane.b32.xlu1 %v1711_v63, %s3541_s18  ;;  %2275 = vrot.lane.b32.xlu2 %v1696_v60, %s3555_s15  ;;  %v1749_v3 = vpop.f32.mrf.mxu2 }
 0x2fe   : > { %v1719_v1 = vpop.f32.mrf.mxu1 }
 0x2ff   : > { %v4487_v42 = vpop.permute.xlu1 %2348 }
 0x301   : > { %v1698_v54 = vpop.f32.mrf.mxu0 }
 0x302   : > { %1946 = vrot.lane.b32.xlu2 %v1744_v28, %s3541_s18  ;;  %v1752_v48 = vpop.f32.mrf.mxu2 }
 0x303   : > { %v4444_v0 = vpop.f32.mrf.mxu3 }
 0x305   : > { %3425 = vmatmul.msk.bf16.gmra.mxu0 %vm786_vm2, %v4293_v53 }
 0x306   : > { %3430 = vmatmul.msk.bf16.gmra.mxu1 %vm786_vm2, %v4293_v53  ;;  %v4461_v53 = vpop.f32.mrf.mxu1 }
 0x307   : > { %v4493_v40 = vpop.permute.xlu1 %2374 }
 0x30a   : > { %v1754_v8 = vpop.f32.mrf.mxu2 }
 0x30b   : > { %v1777_v55 = vpop.f32.mrf.mxu3 }
 0x30c   : > { %1948 = vrot.lane.b32.xlu0 %v1777_v55, %s3541_s18 }
 0x30e   : > { %v4467_v29 = vpop.f32.mrf.mxu1 }
 0x312   : > { %v1757_v20 = vpop.f32.mrf.mxu2 }
 0x313   : > { %v1780_v62 = vpop.f32.mrf.mxu3 }
 0x314   : > { %1996 = vrot.lane.b32.xlu2 %v1780_v62, %s3551_s25 }
 0x315   : > { %3426 = vmatmul.msk.bf16.gmra.mxu0 %vm786_vm2, %v4309_v14 }
 0x316   : > { %3431 = vmatmul.msk.bf16.gmra.mxu1 %vm786_vm2, %v4309_v14  ;;  %v4475_v38 = vpop.f32.mrf.mxu1 }
 0x31a   : > { %v1759_v28 = vpop.f32.mrf.mxu2 }
 0x31b   : > { %v1782_v13 = vpop.f32.mrf.mxu3 }
 0x31c   : > { %2043 = vrot.lane.b32.xlu2 %v1749_v3, %s3547_s16 }
 0x322   : > { %v1762_v3 = vpop.f32.mrf.mxu2 }
 0x323   : > { %v1785_v7 = vpop.f32.mrf.mxu3 }
 0x325   : > { %3427 = vmatmul.msk.bf16.gmra.mxu0 %vm786_vm2, %v4335_v46 }
 0x326   : > { %3432 = vmatmul.msk.bf16.gmra.mxu1 %vm786_vm2, %v4335_v46  ;;  %v1729_v46 = vpop.f32.mrf.mxu1 }
 0x32b   : > { %v1787_v22 = vpop.f32.mrf.mxu3 }
 0x32e   : > { %v1731_v41 = vpop.f32.mrf.mxu1 }
 0x333   : > { %v1790_v47 = vpop.f32.mrf.mxu3 }
 0x334   : > { %v4473_v14 = vpop.permute.xlu0 %1942 }
 0x335   : > { %3428 = vmatmul.msk.bf16.gmra.mxu0 %vm786_vm2, %v4362_v49 }
 0x336   : > { %3433 = vmatmul.msk.bf16.gmra.mxu1 %vm786_vm2, %v4362_v49  ;;  %v4491_v49 = vpop.permute.xlu2 %2362 }
 0x33b   : > { %v1792_v24 = vpop.f32.mrf.mxu3 }
 0x33e   : > { %v4497_v4 = vpop.permute.xlu2 %2376 }
 0x343   : > { %v1795_v55 = vpop.f32.mrf.mxu3 }
 0x344   : > { %v4477_v31 = vpop.permute.xlu0 %2039 }
 0x346   : > { %v4505_v23 = vpop.permute.xlu2 %1990 }
 0x34c   : > { %v4482_v45 = vpop.permute.xlu0 %2083 }
 0x354   : > { %v4489_v57 = vpop.permute.xlu0 %2128 }
 0x35c   : > { %v4495_v35 = vpop.permute.xlu0 %2177 }
 0x364   : > { %v4499_v61 = vpop.permute.xlu1 %2226 }
 0x365   : > { %v4501_v6 = vpop.permute.xlu0 %1992 }
 0x366   : > { %v2004_v10 = vsel %vm2002_vm6, %v4505_v23, %v4501_v6 }
 0x36c   : > { %v4503_v52 = vpop.permute.xlu1 %1944 }
 0x36d   : > { %v1955_v56 = vsel %vm1157_vm4, %v4473_v14, %v4503_v52 }
 0x36e   : > { %v1968_v26 = vadd.f32 %v1955_v56, %v4411_v58 }
 0x370   : > { %v4514_v17 = vadd.f32 %v2004_v10, %v1968_v26  ;;  %v1764_v10 = vpop.f32.mrf.mxu2 }
 0x372   : > { %v4516_v5 = vpop.f32.mrf.mxu0 }
 0x373   : > { %v4518_v63 = vpop.f32.mrf.mxu1 }
 0x37a   : > { %v1810_v50 = vpop.f32.mrf.mxu0 }
 0x37b   : > { %1950 = vrot.lane.b32.xlu1 %v1810_v50, %s3541_s18  ;;  %v1843_v36 = vpop.f32.mrf.mxu1 }
 0x382   : > { %v1813_v37 = vpop.f32.mrf.mxu0 }
 0x383   : > { %1998 = vrot.lane.b32.xlu0 %v1813_v37, %s3551_s25  ;;  %1994 = vrot.lane.b32.xlu1 %v1747_v16, %s3551_s25  ;;  %v1846_v58 = vpop.f32.mrf.mxu1  ;;  %v1797_v16 = vpop.f32.mrf.mxu3 }
 0x38a   : > { %v1815_v60 = vpop.f32.mrf.mxu0 }
 0x38b   : > { %2183 = vrot.lane.b32.xlu0 %v1790_v47, %s3553_s13  ;;  %2041 = vrot.lane.b32.xlu1 %v1716_v39, %s3547_s16  ;;  %v1848_v54 = vpop.f32.mrf.mxu1 }
 0x38c   : > { %2047 = vrot.lane.b32.xlu2 %v1815_v60, %s3547_s16 }
 0x392   : > { %v1818_v62 = vpop.f32.mrf.mxu0 }
 0x393   : > { %2085 = vrot.lane.b32.xlu1 %v1719_v1, %s3549_s20  ;;  %2230 = vrot.lane.b32.xlu0 %v1759_v28, %s3554_s14  ;;  %v1851_v41 = vpop.f32.mrf.mxu1 }
 0x394   : > { %2087 = vrot.lane.b32.xlu2 %v1752_v48, %s3549_s20 }
 0x39a   : > { %v1820_v56 = vpop.f32.mrf.mxu0 }
 0x39b   : > { %2045 = vrot.lane.b32.xlu1 %v1782_v13, %s3547_s16  ;;  %2277 = vrot.lane.b32.xlu0 %v1729_v46, %s3555_s15  ;;  %v1853_v39 = vpop.f32.mrf.mxu1 }
 0x39c   : > { %2132 = vrot.lane.b32.xlu2 %v1754_v8, %s3552_s30 }
 0x3a2   : > { %v1823_v26 = vpop.f32.mrf.mxu0 }
 0x3a3   : > { %2130 = vrot.lane.b32.xlu1 %v4461_v53, %s3552_s30  ;;  %2089 = vrot.lane.b32.xlu0 %v1785_v7, %s3549_s20  ;;  %v1856_v1 = vpop.f32.mrf.mxu1 }
 0x3a4   : > { %2181 = vrot.lane.b32.xlu2 %v1757_v20, %s3553_s13 }
 0x3aa   : > { %v1825_v48 = vpop.f32.mrf.mxu0 }
 0x3ab   : > { %2179 = vrot.lane.b32.xlu1 %v4467_v29, %s3553_s13  ;;  %2136 = vrot.lane.b32.xlu0 %v1820_v56, %s3552_s30  ;;  %v1858_v46 = vpop.f32.mrf.mxu1 }
 0x3ac   : > { %2228 = vrot.lane.b32.xlu2 %v4475_v38, %s3554_s14  ;;  %v4550_v38 = vpop.permute.xlu2 %2275 }
 0x3b2   : > { %v1828_v13 = vpop.f32.mrf.mxu0 }
 0x3b3   : > { %2232 = vrot.lane.b32.xlu1 %v1792_v24, %s3554_s14  ;;  %2234 = vrot.lane.b32.xlu0 %v1825_v48, %s3554_s14  ;;  %v1861_v53 = vpop.f32.mrf.mxu1 }
 0x3b4   : > { %2281 = vrot.lane.b32.xlu2 %v1795_v55, %s3555_s15 }
 0x3ba   : > { %v1830_v7 = vpop.f32.mrf.mxu0 }
 0x3bb   : > { %2279 = vrot.lane.b32.xlu1 %v1762_v3, %s3555_s15  ;;  %2285 = vrot.lane.b32.xlu0 %v1861_v53, %s3555_s15  ;;  %v1863_v29 = vpop.f32.mrf.mxu1 }
 0x3bc   : > { %2134 = vrot.lane.b32.xlu2 %v1787_v22, %s3552_s30  ;;  %v1947_v22 = vpop.permute.xlu2 %1946 }
 0x3c3   : > { %2091 = vrot.lane.b32.xlu1 %v1818_v62, %s3549_s20  ;;  %1952 = vrot.lane.b32.xlu0 %v1843_v36, %s3541_s18  ;;  %v1949_v36 = vpop.permute.xlu0 %1948 }
 0x3c4   : > { %2283 = vrot.lane.b32.xlu2 %v1828_v13, %s3555_s15  ;;  %v1997_v8 = vpop.permute.xlu2 %1996 }
 0x3cb   : > { %2185 = vrot.lane.b32.xlu1 %v1823_v26, %s3553_s13  ;;  %2093 = vrot.lane.b32.xlu0 %v1851_v41, %s3549_s20 }
 0x3cc   : > { %2187 = vrot.lane.b32.xlu2 %v1856_v1, %s3553_s13  ;;  %v2044_v50 = vpop.permute.xlu2 %2043 }
 0x3d3   : > { %2378 = vrot.lane.b32.xlu1 %v1533_v27, %s3549_s20 }
 0x3d4   : > { %2380 = vrot.lane.b32.xlu2 %v1534_v33, %s3549_s20 }
 0x3db   : > { %2236 = vrot.lane.b32.xlu1 %v1858_v46, %s3554_s14  ;;  %v1954_v46 = vsel %vm1157_vm4, %v4455_v19, %v4473_v14  ;;  %v1956_v14 = vsel %vm1157_vm4, %v4503_v52, %v1947_v22 }
 0x3dc   : > { %2049 = vrot.lane.b32.xlu2 %v1848_v54, %s3547_s16 }
 0x3e3   : > { %2000 = vrot.lane.b32.xlu1 %v1846_v58, %s3551_s25 }
 0x3e6   : > { %v4567_v20 = vpop.permute.xlu2 %2047 }
 0x3eb   : > { %2138 = vrot.lane.b32.xlu1 %v1853_v39, %s3552_s30  ;;  %v1957_v39 = vsel %vm1157_vm4, %v1947_v22, %v1949_v36 }
 0x3ec   : > { %v1970_v26 = vadd.f32 %v1957_v39, %v4437_v51  ;;  %v2051_v51 = vsel %vm1348_vm8, %v4484_v25, %v4477_v31  ;;  %v1969_v25 = vadd.f32 %v1956_v14, %v4419_v32 }
 0x3ed   : > { %v4565_v47 = vpop.permute.xlu1 %1950 }
 0x3ee   : > { %v1958_v27 = vsel %vm1157_vm4, %v1949_v36, %v4565_v47  ;;  %v4579_v54 = vpop.permute.xlu2 %2087 }
 0x3ef   : > { %v1971_v33 = vadd.f32 %v1958_v27, %v4444_v0 }
 0x3f5   : > { %v4572_v37 = vpop.permute.xlu0 %1998  ;;  %v1995_v24 = vpop.permute.xlu1 %1994 }
 0x3f6   : > { %v2007_v60 = vsel %vm2002_vm6, %v1997_v8, %v4572_v37  ;;  %v2006_v58 = vsel %vm2002_vm6, %v1995_v24, %v1997_v8  ;;  %v4583_v41 = vpop.permute.xlu2 %2132 }
 0x3f7   : > { %v4577_v28 = vadd.f32 %v2007_v60, %v1971_v33  ;;  %v2019_v1 = vadd.f32 %v2006_v58, %v1970_v26  ;;  %v2005_v58 = vsel %vm2002_vm6, %v4501_v6, %v1995_v24 }
 0x3f8   : > { %v2018_v22 = vadd.f32 %v2005_v58, %v1969_v25 }
 0x3fd   : > { %v2042_v55 = vpop.permute.xlu1 %2041  ;;  %v4589_v10 = vpop.permute.xlu0 %2183 }
 0x3fe   : > { %v2052_v62 = vsel %vm1348_vm8, %v4477_v31, %v2042_v55  ;;  %v2182_v53 = vpop.permute.xlu2 %2181 }
 0x3ff   : > { %v2065_v0 = vadd.f32 %v2052_v62, %v4514_v17  ;;  %v2003_v17 = vsel %vm2002_vm6, %v4480_v44, %v4505_v23 }
 0x400   : > { %v2016_v29 = vadd.f32 %v2003_v17, %v1954_v46 }
 0x402   : > { %v2064_v36 = vadd.f32 %v2051_v51, %v2016_v29 }
 0x404   : > { %v2107_v19 = vadd.f32 %v4482_v45, %v2064_v36 }
 0x405   : > { %v2086_v3 = vpop.permute.xlu1 %2085  ;;  %v2231_v8 = vpop.permute.xlu0 %2230 }
 0x406   : > { %v2095_v16 = vsel %vm1446_vm10, %v4482_v45, %v2086_v3  ;;  %v2229_v33 = vpop.permute.xlu2 %2228  ;;  %v2156_v60 = vadd.f32 %v4489_v57, %v2107_v19  ;;  %v2053_v45 = vsel %vm1348_vm8, %v2042_v55, %v2044_v50 }
 0x407   : > { %v2108_v56 = vadd.f32 %v2095_v16, %v2065_v0  ;;  %v2241_v52 = vsel %vm2240_vm9, %v4499_v61, %v2229_v33  ;;  %v2096_v16 = vsel %vm1446_vm10, %v2086_v3, %v4579_v54  ;;  %v2066_v24 = vadd.f32 %v2053_v45, %v2018_v22 }
 0x408   : > { %v2242_v19 = vsel %vm2240_vm9, %v2229_v33, %v2231_v8 }
 0x409   : > { %v2109_v61 = vadd.f32 %v2096_v16, %v2066_v24 }
 0x40d   : > { %v4592_v48 = vpop.permute.xlu1 %2045  ;;  %v2278_v44 = vpop.permute.xlu0 %2277 }
 0x40e   : > { %v2054_v13 = vsel %vm1348_vm8, %v2044_v50, %v4592_v48  ;;  %v2290_v6 = vsel %vm2289_vm11, %v4550_v38, %v2278_v44 }
 0x40f   : > { %v4602_v7 = vadd.f32 %v2054_v13, %v2019_v1 }
 0x415   : > { %v2131_v27 = vpop.permute.xlu1 %2130  ;;  %v4631_v17 = vpop.permute.xlu0 %2089 }
 0x416   : > { %v2143_v39 = vsel %vm2142_vm12, %v4489_v57, %v2131_v27  ;;  %v2144_v50 = vsel %vm2142_vm12, %v2131_v27, %v4583_v41  ;;  %v2194_v57 = vsel %vm2191_vm7, %v2182_v53, %v4589_v10 }
 0x417   : > { %v2157_v3 = vadd.f32 %v2143_v39, %v2108_v56  ;;  %v2158_v46 = vadd.f32 %v2144_v50, %v2109_v61 }
 0x419   : > { %v2207_v27 = vadd.f32 %v2194_v57, %v2158_v46 }
 0x41d   : > { %v2180_v23 = vpop.permute.xlu1 %2179  ;;  %v4645_v22 = vpop.permute.xlu0 %2136 }
 0x41e   : > { %v2192_v31 = vsel %vm2191_vm7, %v4495_v35, %v2180_v23  ;;  %v4623_v35 = vpop.permute.xlu2 %2281  ;;  %v2193_v1 = vsel %vm2191_vm7, %v2180_v23, %v2182_v53 }
 0x41f   : > { %v2205_v62 = vadd.f32 %v2192_v31, %v2156_v60  ;;  %v2206_v13 = vadd.f32 %v2193_v1, %v2157_v3  ;;  %v2384_v1 = vsel %vm1446_vm10, %v4465_v9, %v4493_v40 }
 0x421   : > { %v2254_v0 = vadd.f32 %v2241_v52, %v2205_v62  ;;  %v2255_v58 = vadd.f32 %v2242_v19, %v2206_v13 }
 0x423   : > { %v2303_v32 = vadd.f32 %v2290_v6, %v2254_v0 }
 0x425   : > { %v2316_v55 = vadd.f32 %v4463_v2, %v2303_v32  ;;  %v2233_v26 = vpop.permute.xlu1 %2232  ;;  %v2097_v32 = vsel %vm1446_vm10, %v4579_v54, %v4631_v17  ;;  %v2235_v13 = vpop.permute.xlu0 %2234 }
 0x426   : > { %v2243_v51 = vsel %vm2240_vm9, %v2231_v8, %v2233_v26  ;;  %v4639_v56 = vpop.permute.xlu2 %2134  ;;  %v2110_v3 = vadd.f32 %v2097_v32, %v4602_v7  ;;  %v2244_v19 = vsel %vm2240_vm9, %v2233_v26, %v2235_v13 }
 0x427   : > { %v2330_v38 = vmul.f32 0.01, %v2316_v55  ;;  %vm2323_vm13 = vcmp.ge.f32.partialorder %v2316_v55, 0.0  ;;  %v2256_v23 = vadd.f32 %v2243_v51, %v2207_v27  ;;  %v2145_v57 = vsel %vm2142_vm12, %v4583_v41, %v4639_v56 }
 0x428   : > { %v2055_v41 = vsel %vm1348_vm8, %v4592_v48, %v4567_v20 }
 0x429   : > { %v2337_v29 = vsel %vm2323_vm13, %v2316_v55, %v2330_v38  ;;  %v2385_v38 = vsel %vm1446_vm10, %v4493_v40, %v4497_v4  ;;  %v2068_v26 = vadd.f32 %v2055_v41, %v4577_v28 }
 0x42a   : > { %v2351_v36 = vmul.f32 %v4487_v42, %v2337_v29 }
 0x42c   : > { %v2365_v14 = vadd.f32 %v4491_v49, %v2351_v36 }
 0x42d   : > { %v2280_v60 = vpop.permute.xlu1 %2279 }
 0x42e   : > { %v2291_v31 = vsel %vm2289_vm11, %v2278_v44, %v2280_v60  ;;  %v2292_v25 = vsel %vm2289_vm11, %v2280_v60, %v4623_v35  ;;  %v2396_v53 = vmul.f32 %v4465_v9, %v2365_v14  ;;  %v2284_v50 = vpop.permute.xlu2 %2283  ;;  %v2159_v9 = vadd.f32 %v2145_v57, %v2110_v3 }
 0x42f   : > { %v2304_v62 = vadd.f32 %v2291_v31, %v2255_v58  ;;  %v2305_v45 = vadd.f32 %v2292_v25, %v2256_v23  ;;  %v2293_v60 = vsel %vm2289_vm11, %v4623_v35, %v2284_v50  ;;  %v4690_v31 = vpop.permute.xlu0 %2285 }
 0x430   : > { %v2407_v52 = vpack.c.bf16 %v2396_v53, %v2396_v53 }
 0x431   : > { %v2317_v8 = vadd.f32 %v4463_v2, %v2304_v62  ;;  %v2318_v33 = vadd.f32 %v4463_v2, %v2305_v45 }
 0x432   : > { %2431 = vrot.lane.b32.xlu0 %v2407_v52, %s3556_s17 }
 0x433   : > { %vm2324_vm14 = vcmp.ge.f32.partialorder %v2317_v8, 0.0  ;;  %vm2325_vm15 = vcmp.ge.f32.partialorder %v2318_v33, 0.0  ;;  %v2331_v44 = vmul.f32 0.01, %v2317_v8  ;;  %v2332_v0 = vmul.f32 0.01, %v2318_v33 }
 0x435   : > { %v2338_v16 = vsel %vm2324_vm14, %v2317_v8, %v2331_v44  ;;  %v2339_v6 = vsel %vm2325_vm15, %v2318_v33, %v2332_v0  ;;  %v4650_v24 = vpop.permute.xlu1 %2091  ;;  %v2294_v0 = vsel %vm2289_vm11, %v2284_v50, %v4690_v31 }
 0x436   : > { %v2352_v39 = vmul.f32 %v4487_v42, %v2338_v16  ;;  %v2353_v61 = vmul.f32 %v4487_v42, %v2339_v6  ;;  %v4676_v14 = vpop.permute.xlu2 %2187  ;;  %v2098_v58 = vsel %vm1446_vm10, %v4631_v17, %v4650_v24 }
 0x437   : > { %v2111_v48 = vadd.f32 %v2098_v58, %v2068_v26  ;;  %v1953_v6 = vpop.permute.xlu0 %1952 }
 0x438   : > { %v2366_v55 = vadd.f32 %v4491_v49, %v2352_v39  ;;  %v2367_v46 = vadd.f32 %v4491_v49, %v2353_v61 }
 0x43a   : > { %2189 = vrot.lane.b32.xlu0 %v3540_v15, %s3553_s13  ;;  %v2397_v54 = vmul.f32 %v2384_v1, %v2366_v55  ;;  %v2398_v29 = vmul.f32 %v2385_v38, %v2367_v46  ;;  %v1959_v55 = vsel %vm1157_vm4, %v4565_v47, %v1953_v6 }
 0x43b   : > { %v1972_v50 = vadd.f32 %v1959_v55, %v4516_v5 }
 0x43c   : > { %v2408_v51 = vpack.c.bf16 %v2397_v54, %v2397_v54  ;;  %v2409_v7 = vpack.c.bf16 %v2398_v29, %v2398_v29 }
 0x43d   : > { %v2186_v36 = vpop.permute.xlu1 %2185 }
 0x43e   : > { %v2195_v27 = vsel %vm2191_vm7, %v4589_v10, %v2186_v36  ;;  %2433 = vrot.lane.b32.xlu1 %v2408_v51, %s3556_s17  ;;  %2435 = vrot.lane.b32.xlu2 %v2409_v7, %s3556_s17  ;;  %v2196_v28 = vsel %vm2191_vm7, %v2186_v36, %v4676_v14  ;;  %v4703_v62 = vpop.permute.xlu2 %2380 }
 0x43f   : > { %v2208_v40 = vadd.f32 %v2195_v27, %v2159_v9 }
 0x441   : > { %v2257_v23 = vadd.f32 %v2244_v19, %v2208_v40 }
 0x442   : > { %2382 = vrot.lane.b32.xlu0 %v1535_v18, %s3549_s20  ;;  %v2146_v18 = vsel %vm2142_vm12, %v4639_v56, %v4645_v22 }
 0x443   : > { %v2306_v10 = vadd.f32 %v2293_v60, %v2257_v23  ;;  %v2160_v45 = vadd.f32 %v2146_v18, %v2111_v48  ;;  %v1973_v60 = vadd.f32 %v1953_v6, %v4518_v63  ;;  %v4748_v63 = vld [vmem:[%s5006_s5] sm:$0xff] }
 0x445   : > { %v2319_v25 = vadd.f32 %v4463_v2, %v2306_v10  ;;  %v2379_v53 = vpop.permute.xlu1 %2378  ;;  %v2209_v8 = vadd.f32 %v2196_v28, %v2160_v45 }
 0x446   : > { %2238 = vrot.lane.b32.xlu1 %v3540_v15, %s3554_s14  ;;  %2140 = vrot.lane.b32.xlu2 %v3540_v15, %s3552_s30  ;;  %v2386_v33 = vsel %vm1446_vm10, %v4497_v4, %v2379_v53  ;;  %v2050_v1 = vpop.permute.xlu2 %2049  ;;  %v2387_v51 = vsel %vm1446_vm10, %v2379_v53, %v4703_v62 }
 0x447   : > { %vm2326_vm3 = vcmp.ge.f32.partialorder %v2319_v25, 0.0  ;;  %v2333_v35 = vmul.f32 0.01, %v2319_v25  ;;  %v2056_v57 = vsel %vm1348_vm8, %v4567_v20, %v2050_v1  ;;  %v3457_v20 = vld [vmem:[%s5010_s9 + $0x10] sm:$0xff] }
 0x449   : > { %v2340_v43 = vsel %vm2326_vm3, %v2319_v25, %v2333_v35 }
 0x44a   : > { %v2354_v17 = vmul.f32 %v4487_v42, %v2340_v43 }
 0x44c   : > { %v2368_v52 = vadd.f32 %v4491_v49, %v2354_v17  ;;  %v4753_v17 = vld [vmem:[%s5007_s6 + $0x4] sm:$0xf] }
 0x44d   : > { %v4708_v44 = vpop.permute.xlu1 %2236 }
 0x44e   : > { %v2399_v56 = vmul.f32 %v2386_v33, %v2368_v52  ;;  %v2245_v16 = vsel %vm2240_vm9, %v2235_v13, %v4708_v44  ;;  %2287 = vrot.lane.b32.xlu2 %v3540_v15, %s3555_s15  ;;  %v2094_v13 = vpop.permute.xlu0 %2093  ;;  %s4989_s15 = scalar_lea.vmem %s5013_s12, %s3503_s23 }
 0x44f   : > { %v2258_v32 = vadd.f32 %v2245_v16, %v2209_v8  ;;  %v2099_v5 = vsel %vm1446_vm10, %v4650_v24, %v2094_v13 }
 0x450   : > { %v2410_v39 = vpack.c.bf16 %v2399_v56, %v2399_v56 }
 0x451   : > { %v2307_v61 = vadd.f32 %v2294_v0, %v2258_v32 }
 0x452   : > { %2437 = vrot.lane.b32.xlu1 %v2410_v39, %s3556_s17 }
 0x453   : > { %v2320_v4 = vadd.f32 %v4463_v2, %v2307_v61 }
 0x455   : > { %vm2327_vm5 = vcmp.ge.f32.partialorder %v2320_v4, 0.0  ;;  %v2334_v3 = vmul.f32 0.01, %v2320_v4  ;;  %v2001_v46 = vpop.permute.xlu1 %2000 }
 0x456   : > { %v2008_v38 = vsel %vm2002_vm6, %v4572_v37, %v2001_v46  ;;  %v2022_v10 = vadd.f32 %v2001_v46, %v1973_v60  ;;  %vm2445_vm6 = vcmask 605184  }
 0x457   : > { %v2021_v54 = vadd.f32 %v2008_v38, %v1972_v50  ;;  %v2341_v29 = vsel %vm2327_vm5, %v2320_v4, %v2334_v3 }
 0x458   : > { %v2355_v47 = vmul.f32 %v4487_v42, %v2341_v29 }
 0x459   : > { %v2069_v9 = vadd.f32 %v2056_v57, %v2021_v54 }
 0x45a   : > { %v2369_v36 = vadd.f32 %v4491_v49, %v2355_v47 }
 0x45b   : > { %v2112_v27 = vadd.f32 %v2099_v5, %v2069_v9 }
 0x45c   : > { %v2400_v7 = vmul.f32 %v2387_v51, %v2369_v36 }
 0x45d   : > { %v2139_v37 = vpop.permute.xlu1 %2138 }
 0x45e   : > { %v2147_v40 = vsel %vm2142_vm12, %v4645_v22, %v2139_v37  ;;  %v2411_v19 = vpack.c.bf16 %v2400_v7, %v2400_v7  ;;  %v2070_v22 = vadd.f32 %v2050_v1, %v2022_v10 }
 0x45f   : > { %v2161_v23 = vadd.f32 %v2147_v40, %v2112_v27 }
 0x460   : > { %2439 = vrot.lane.b32.xlu2 %v2411_v19, %s3556_s17  ;;  %v2113_v28 = vadd.f32 %v2094_v13, %v2070_v22 }
 0x468   : > { %2635 = vrot.lane.b32.xlu2 %v3540_v15, %s3541_s18 }
 0x470   : > { %2817 = vperm.xlu2 %3531, %v3457_v20  }
 0x498   : > { %v2436_v24 = vpop.permute.xlu2 %2435 }
 0x4a0   : > { %v2141_v58 = vpop.permute.xlu2 %2140 }
 0x4a1   : > { %v2148_v48 = vsel %vm2142_vm12, %v2139_v37, %v2141_v58 }
 0x4a2   : > { %v2162_v45 = vadd.f32 %v2148_v48, %v2113_v28 }
 0x4a4   : > { %v2432_v41 = vpop.permute.xlu0 %2431 }
 0x4a8   : > { %v2288_v0 = vpop.permute.xlu2 %2287 }
 0x4a9   : > { %v2295_v32 = vsel %vm2289_vm11, %v4690_v31, %v2288_v0 }
 0x4ac   : > { %v2190_v35 = vpop.permute.xlu0 %2189 }
 0x4ad   : > { %v2197_v52 = vsel %vm2191_vm7, %v4676_v14, %v2190_v35  ;;  %v2211_v8 = vadd.f32 %v2190_v35, %v2162_v45 }
 0x4ae   : > { %v2210_v33 = vadd.f32 %v2197_v52, %v2161_v23 }
 0x4b0   : > { %v2434_v26 = vpop.permute.xlu1 %2433 }
 0x4b1   : > { %v2446_v25 = vsel %vm2445_vm6, %v2432_v41, %v2434_v26  ;;  %v2447_v53 = vsel %vm2445_vm6, %v2434_v26, %v2436_v24 }
 0x4b2   : > { %v2459_v43 = vsel %vm802_vm1, %v2446_v25, 0  ;;  %v2462_v18 = vsel %vm802_vm1, %v2447_v53, 0 }
 0x4b3   : > { %2483 = vmatpush.bf16.msra.mxu2 %v2459_v43  ;;  %2502 = vmatpush.bf16.msra.mxu3 %v2462_v18 }
 0x4b4   : > { %2840 = vmatpush.bf16.msrb.mxu0 %v2459_v43  ;;  %2853 = vmatpush.bf16.msrb.mxu1 %v2462_v18  ;;  %v2383_v31 = vpop.permute.xlu0 %2382 }
 0x4b5   : > { %v2388_v36 = vsel %vm1446_vm10, %v4703_v62, %v2383_v31 }
 0x4b6   : > { %3444 = vmatmul.msk.bf16.vlgmr.msra.gmra.mxu2 %vm786_vm2, %v4748_v63  ;;  %3446 = vmatmul.msk.bf16.vlgmr.msra.gmra.mxu3 %vm786_vm2, %v4748_v63 }
 0x4b7   : > { %3459 = vmatmul.msk.bf16.vlgmr.msrb.gmra.mxu0 %vm786_vm2, %v4753_v17  ;;  %3460 = vmatmul.msk.bf16.vlgmr.msrb.gmra.mxu1 %vm786_vm2, %v4753_v17 }
 0x4b8   : > { %v2239_v56 = vpop.permute.xlu1 %2238 }
 0x4b9   : > { %v2246_v16 = vsel %vm2240_vm9, %v4708_v44, %v2239_v56  ;;  %v2260_v14 = vadd.f32 %v2239_v56, %v2211_v8  ;;  %v4775_v44 = vld [vmem:[%s5006_s5 + $0x8] sm:$0xff] }
 0x4ba   : > { %v2259_v6 = vadd.f32 %v2246_v16, %v2210_v33  ;;  %v2440_v13 = vpop.permute.xlu2 %2439 }
 0x4bb   : > { %v2309_v39 = vadd.f32 %v2288_v0, %v2260_v14 }
 0x4bc   : > { %v2308_v61 = vadd.f32 %v2295_v32, %v2259_v6 }
 0x4bd   : > { %v2322_v55 = vadd.f32 %v4463_v2, %v2309_v39 }
 0x4be   : > { %v2321_v4 = vadd.f32 %v4463_v2, %v2308_v61 }
 0x4bf   : > { %v2336_v50 = vmul.f32 0.01, %v2322_v55  ;;  %vm2329_vm7 = vcmp.ge.f32.partialorder %v2322_v55, 0.0 }
 0x4c0   : > { %v2335_v1 = vmul.f32 0.01, %v2321_v4  ;;  %vm2328_vm12 = vcmp.ge.f32.partialorder %v2321_v4, 0.0 }
 0x4c1   : > { %v2343_v3 = vsel %vm2329_vm7, %v2322_v55, %v2336_v50 }
 0x4c2   : > { %v2342_v46 = vsel %vm2328_vm12, %v2321_v4, %v2335_v1  ;;  %v2357_v38 = vmul.f32 %v4487_v42, %v2343_v3 }
 0x4c3   : > { %v2356_v54 = vmul.f32 %v4487_v42, %v2342_v46 }
 0x4c4   : > { %v2438_v29 = vpop.permute.xlu1 %2437  ;;  %v2371_v2 = vadd.f32 %v4491_v49, %v2357_v38 }
 0x4c5   : > { %v2448_v57 = vsel %vm2445_vm6, %v2436_v24, %v2438_v29  ;;  %v2449_v47 = vsel %vm2445_vm6, %v2438_v29, %v2440_v13  ;;  %v2370_v51 = vadd.f32 %v4491_v49, %v2356_v54 }
 0x4c6   : > { %v2465_v9 = vsel %vm802_vm1, %v2448_v57, 0  ;;  %v2468_v5 = vsel %vm802_vm1, %v2449_v47, 0  ;;  %v2402_v7 = vmul.f32 %v2383_v31, %v2371_v2  ;;  %3445 = vmatmul.msk.bf16.gmra.mxu2 %vm786_vm2, %v4775_v44  ;;  %3447 = vmatmul.msk.bf16.gmra.mxu3 %vm786_vm2, %v4775_v44 }
 0x4c7   : > { %v2401_v42 = vmul.f32 %v2388_v36, %v2370_v51  ;;  %2521 = vmatpush.bf16.msrb.mxu2 %v2465_v9  ;;  %2540 = vmatpush.bf16.msrb.mxu3 %v2468_v5 }
 0x4c8   : > { %v2413_v27 = vpack.c.bf16 %v2402_v7, %v2402_v7  ;;  %2866 = vmatpush.bf16.msra.mxu0 %v2465_v9  ;;  %2879 = vmatpush.bf16.msra.mxu1 %v2468_v5 }
 0x4c9   : > { %v2412_v49 = vpack.c.bf16 %v2401_v42, %v2401_v42 }
 0x4ca   : > { %2443 = vrot.lane.b32.xlu1 %v2413_v27, %s3556_s17 }
 0x4cb   : > { %3461 = vmatmul.msk.bf16.vlgmr.msra.gmra.mxu0 %vm786_vm2, %v4753_v17  ;;  %2441 = vrot.lane.b32.xlu0 %v2412_v49, %s3556_s17 }
 0x4cc   : > { %2921 = vmatpush.bf16.msrb.mxu0 %v4280_v30  ;;  %2934 = vmatpush.bf16.msrb.mxu1 %v4299_v11  ;;  %v3456_v30 = vld [vmem:[%s5010_s9 + $0x8] sm:$0xff]  ;;  %v2765_v11 = vld [vmem:[%s5010_s9] sm:$0xff] }
 0x4cd   : > { %3462 = vmatmul.msk.bf16.vlgmr.msra.gmra.mxu1 %vm786_vm2, %v4753_v17 }
 0x4d0   : > { %2973 = vmatpush.bf16.msra.mxu0 %v4426_v12  ;;  %2986 = vmatpush.bf16.msra.mxu1 %v4429_v59 }
 0x4d2   : > { %2803 = vperm.xlu1 %3530, %v3456_v30  }
 0x4d3   : > { %2768 = vperm.xlu0 %3529, %v2765_v11  }
 0x4d6   : > { %3448 = vmatmul.msk.bf16.vlgmr.msrb.gmra.mxu2 %vm786_vm2, %v4748_v63  ;;  %3450 = vmatmul.msk.bf16.vlgmr.msrb.gmra.mxu3 %vm786_vm2, %v4748_v63 }
 0x4db   : > { %2695 = vrot.lane.b32.xlu0 %v3540_v15, %s3547_s16 }
 0x4e6   : > { %3451 = vmatmul.msk.bf16.gmra.mxu3 %vm786_vm2, %v4775_v44  ;;  %3449 = vmatmul.msk.bf16.gmra.mxu2 %vm786_vm2, %v4775_v44 }
 0x539   : > { %v4816_v12 = vpop.f32.mrf.mxu2  ;;  %v4818_v59 = vpop.f32.mrf.mxu3 }
 0x53c   : > { %v2444_v62 = vpop.permute.xlu1 %2443 }
 0x53d   : > { %v2442_v37 = vpop.permute.xlu0 %2441 }
 0x53e   : > { %v2450_v40 = vsel %vm2445_vm6, %v2440_v13, %v2442_v37  ;;  %v2451_v19 = vsel %vm2445_vm6, %v2442_v37, %v2444_v62 }
 0x53f   : > { %v2471_v23 = vsel %vm802_vm1, %v2450_v40, 0  ;;  %v2474_v20 = vsel %vm802_vm1, %v2451_v19, 0 }
 0x540   : > { %2559 = vmatpush.bf16.msra.mxu2 %v2471_v23  ;;  %2578 = vmatpush.bf16.msra.mxu3 %v2474_v20 }
 0x541   : > { %v2487_v24 = vpop.f32.mrf.mxu2  ;;  %v2506_v41 = vpop.f32.mrf.mxu3 }
 0x542   : > { %2639 = vrot.lane.b32.xlu0 %v2506_v41, %s3541_s18  ;;  %2637 = vrot.lane.b32.xlu2 %v2487_v24, %s3541_s18 }
 0x543   : > { %3452 = vmatmul.msk.bf16.vlgmr.msra.gmra.mxu2 %vm786_vm2, %v4748_v63  ;;  %3454 = vmatmul.msk.bf16.vlgmr.msra.gmra.mxu3 %vm786_vm2, %v4748_v63  ;;  %v2636_v63 = vpop.permute.xlu2 %2635 }
 0x544   : > { %2892 = vmatpush.bf16.msrb.mxu2 %v2471_v23  ;;  %2905 = vmatpush.bf16.msrb.mxu3 %v2474_v20  ;;  %v4857_v45 = vpop.permute.xlu1 %2803 }
 0x545   : > { %v4853_v43 = vpop.permute.xlu0 %2768 }
 0x548   : > { %2947 = vmatpush.bf16.msra.mxu2 %v4317_v34  ;;  %2960 = vmatpush.bf16.msra.mxu3 %v4369_v21 }
 0x549   : > { %v2490_v60 = vpop.f32.mrf.mxu2  ;;  %v2509_v10 = vpop.f32.mrf.mxu3 }
 0x54a   : > { %2685 = vrot.lane.b32.xlu1 %v2509_v10, %s3547_s16  ;;  %2683 = vrot.lane.b32.xlu0 %v2490_v60, %s3547_s16 }
 0x54b   : > { %v4859_v52 = vpop.permute.xlu2 %2817 }
 0x54d   : > { %v4855_v18 = vpop.permute.xlu0 %2695 }
 0x551   : > { %v2492_v58 = vpop.f32.mrf.mxu2  ;;  %v2511_v22 = vpop.f32.mrf.mxu3 }
 0x552   : > { %2733 = vrot.lane.b32.xlu1 %v2511_v22, %s3549_s20  ;;  %2731 = vrot.lane.b32.xlu0 %v2492_v58, %s3549_s20 }
 0x553   : > { %3453 = vmatmul.msk.bf16.gmra.mxu2 %vm786_vm2, %v4775_v44  ;;  %3455 = vmatmul.msk.bf16.gmra.mxu3 %vm786_vm2, %v4775_v44 }
 0x559   : > { %v4840_v34 = vpop.f32.mrf.mxu2  ;;  %v4842_v21 = vpop.f32.mrf.mxu3 }
 0x561   : > { %v2525_v26 = vpop.f32.mrf.mxu2  ;;  %v2544_v25 = vpop.f32.mrf.mxu3 }
 0x562   : > { %2641 = vrot.lane.b32.xlu1 %v2525_v26, %s3541_s18  ;;  %2643 = vrot.lane.b32.xlu0 %v2544_v25, %s3541_s18  ;;  %v2827_v26 = vld [vmem:[%s5007_s6] sm:$0xf] }
 0x563   : > { %3463 = vmatmul.msk.bf16.vlgmr.msrb.gmra.mxu2 %vm786_vm2, %v4753_v17  ;;  %3464 = vmatmul.msk.bf16.vlgmr.msrb.gmra.mxu3 %vm786_vm2, %v4753_v17 }
 0x564   : > { %3465 = vmatmul.msk.bf16.vlgmr.msrb.gmra.mxu0 %vm786_vm2, %v2827_v26  ;;  %3466 = vmatmul.msk.bf16.vlgmr.msrb.gmra.mxu1 %vm786_vm2, %v2827_v26 }
 0x569   : > { %v2547_v53 = vpop.f32.mrf.mxu3  ;;  %v2528_v48 = vpop.f32.mrf.mxu2 }
 0x56a   : > { %2689 = vrot.lane.b32.xlu0 %v2547_v53, %s3547_s16  ;;  %2687 = vrot.lane.b32.xlu2 %v2528_v48, %s3547_s16 }
 0x571   : > { %v2530_v35 = vpop.f32.mrf.mxu2  ;;  %v2549_v17 = vpop.f32.mrf.mxu3 }
 0x572   : > { %2735 = vrot.lane.b32.xlu2 %v2530_v35, %s3549_s20 }
 0x573   : > { %3467 = vmatmul.msk.bf16.vlgmr.msra.gmra.mxu2 %vm786_vm2, %v2827_v26  ;;  %3468 = vmatmul.msk.bf16.vlgmr.msra.gmra.mxu3 %vm786_vm2, %v2827_v26 }
 0x574   : > { %3469 = vmatmul.msk.bf16.vlgmr.msra.gmra.mxu0 %vm786_vm2, %v2827_v26  ;;  %3470 = vmatmul.msk.bf16.vlgmr.msra.gmra.mxu1 %vm786_vm2, %v2827_v26 }
 0x59c   : > { %v2638_v0 = vpop.permute.xlu2 %2637 }
 0x59d   : > { %v2649_v14 = vsel %vm1157_vm4, %v2636_v63, %v2638_v0 }
 0x5b4   : > { %v2640_v28 = vpop.permute.xlu0 %2639 }
 0x5b5   : > { %v2650_v6 = vsel %vm1157_vm4, %v2638_v0, %v2640_v28 }
 0x5b6   : > { %v2663_v50 = vadd.f32 %v2650_v6, %v4816_v12 }
 0x5bc   : > { %v2686_v8 = vpop.permute.xlu1 %2685  ;;  %v2684_v33 = vpop.permute.xlu0 %2683 }
 0x5bd   : > { %v2697_v61 = vsel %vm1348_vm8, %v2684_v33, %v2686_v8  ;;  %v2710_v55 = vadd.f32 %v2684_v33, %v2649_v14 }
 0x5be   : > { %v2711_v3 = vadd.f32 %v2697_v61, %v2663_v50 }
 0x5c4   : > { %v2734_v32 = vpop.permute.xlu1 %2733  ;;  %v2732_v39 = vpop.permute.xlu0 %2731 }
 0x5c5   : > { %v4868_v4 = vpop.permute.xlu2 %2687  ;;  %v2745_v1 = vsel %vm1446_vm10, %v2732_v39, %v2734_v32  ;;  %v2758_v46 = vadd.f32 %v2732_v39, %v2710_v55 }
 0x5c6   : > { %v4861_v56 = vpop.f32.mrf.mxu2  ;;  %v4863_v16 = vpop.f32.mrf.mxu3  ;;  %v2759_v31 = vadd.f32 %v2745_v1, %v2711_v3  ;;  %v2698_v57 = vsel %vm1348_vm8, %v2686_v8, %v4868_v4 }
 0x5c7   : > { %v2771_v54 = vadd.f32 %v4853_v43, %v2758_v46 }
 0x5c8   : > { %v2772_v13 = vadd.f32 %v4853_v43, %v2759_v31 }
 0x5c9   : > { %v2785_v51 = vmul.f32 0.01, %v2771_v54  ;;  %vm2778_vm9 = vcmp.ge.f32.partialorder %v2771_v54, 0.0 }
 0x5ca   : > { %v2786_v7 = vmul.f32 0.01, %v2772_v13  ;;  %vm2779_vm11 = vcmp.ge.f32.partialorder %v2772_v13, 0.0 }
 0x5cb   : > { %v2792_v49 = vsel %vm2778_vm9, %v2771_v54, %v2785_v51 }
 0x5cc   : > { %v2793_v11 = vsel %vm2779_vm11, %v2772_v13, %v2786_v7 }
 0x5cd   : > { %v4876_v2 = vpop.permute.xlu2 %2735  ;;  %v2807_v19 = vmul.f32 %v4857_v45, %v2793_v11 }
 0x5ce   : > { %v2563_v38 = vpop.f32.mrf.mxu2  ;;  %v2582_v44 = vpop.f32.mrf.mxu3  ;;  %v2746_v42 = vsel %vm1446_vm10, %v2734_v32, %v4876_v2 }
 0x5cf   : > { %2645 = vrot.lane.b32.xlu1 %v2563_v38, %s3541_s18  ;;  %2647 = vrot.lane.b32.xlu2 %v2582_v44, %s3541_s18  ;;  %v2821_v24 = vadd.f32 %v4859_v52, %v2807_v19 }
 0x5d1   : > { %v2995_v10 = vpack.c.bf16 %v2821_v24, %v2821_v24 }
 0x5d4   : > { %v2642_v29 = vpop.permute.xlu1 %2641  ;;  %v2644_v25 = vpop.permute.xlu0 %2643 }
 0x5d5   : > { %v2651_v47 = vsel %vm1157_vm4, %v2640_v28, %v2642_v29  ;;  %v2652_v28 = vsel %vm1157_vm4, %v2642_v29, %v2644_v25 }
 0x5d6   : > { %v2664_v9 = vadd.f32 %v2651_v47, %v4818_v59  ;;  %v2566_v5 = vpop.f32.mrf.mxu2  ;;  %v2585_v36 = vpop.f32.mrf.mxu3  ;;  %v2806_v59 = vmul.f32 %v4857_v45, %v2792_v49  ;;  %v2665_v14 = vadd.f32 %v2652_v28, %v4840_v34 }
 0x5d7   : > { %2691 = vrot.lane.b32.xlu1 %v2566_v5, %s3547_s16  ;;  %2693 = vrot.lane.b32.xlu2 %v2585_v36, %s3547_s16 }
 0x5d8   : > { %v2712_v27 = vadd.f32 %v2698_v57, %v2664_v9  ;;  %v2820_v23 = vadd.f32 %v4859_v52, %v2806_v59 }
 0x5da   : > { %v2760_v30 = vadd.f32 %v2746_v42, %v2712_v27  ;;  %v2994_v41 = vpack.c.bf16 %v2820_v23, %v2820_v23 }
 0x5dc   : > { %v2773_v12 = vadd.f32 %v4853_v43, %v2760_v30  ;;  %v2690_v63 = vpop.permute.xlu0 %2689 }
 0x5dd   : > { %v2699_v33 = vsel %vm1348_vm8, %v4868_v4, %v2690_v63 }
 0x5de   : > { %v2787_v62 = vmul.f32 0.01, %v2773_v12  ;;  %v2568_v37 = vpop.f32.mrf.mxu2  ;;  %v2587_v40 = vpop.f32.mrf.mxu3  ;;  %vm2780_vm13 = vcmp.ge.f32.partialorder %v2773_v12, 0.0  ;;  %v2713_v55 = vadd.f32 %v2699_v33, %v2665_v14 }
 0x5df   : > { %2737 = vrot.lane.b32.xlu1 %v2549_v17, %s3549_s20  ;;  %2739 = vrot.lane.b32.xlu2 %v2568_v37, %s3549_s20 }
 0x5e0   : > { %2741 = vrot.lane.b32.xlu0 %v2587_v40, %s3549_s20  ;;  %v2794_v20 = vsel %vm2780_vm13, %v2773_v12, %v2787_v62  ;;  %v4940_v40 = vld [vmem:[%s5007_s6 + $0x8] sm:$0xf] }
 0x5e1   : > { %v2808_v60 = vmul.f32 %v4857_v45, %v2794_v20 }
 0x5e3   : > { %v2822_v58 = vadd.f32 %v4859_v52, %v2808_v60 }
 0x5e5   : > { %v2996_v22 = vpack.c.bf16 %v2822_v58, %v2822_v58 }
 0x5e6   : > { %v2907_v33 = vpop.f32.mrf.mxu3 }
 0x5e7   : > { %2743 = vrot.lane.b32.xlu1 %v3540_v15, %s3549_s20  ;;  %3008 = vrot.lane.b32.xlu2 %v2994_v41, %s3550_s19 }
 0x5e8   : > { %3010 = vrot.lane.b32.xlu0 %v2995_v10, %s3550_s19 }
 0x5ef   : > { %3012 = vrot.lane.b32.xlu1 %v2996_v22, %s3550_s19 }
 0x629   : > { %v2648_v15 = vpop.permute.xlu2 %2647 }
 0x62a   : > { %v2668_v57 = vadd.f32 %v2648_v15, %v4863_v16 }
 0x631   : > { %v2694_v48 = vpop.permute.xlu2 %2693 }
 0x639   : > { %v2740_v39 = vpop.permute.xlu2 %2739 }
 0x641   : > { %v2646_v53 = vpop.permute.xlu1 %2645  ;;  %v3009_v7 = vpop.permute.xlu2 %3008 }
 0x642   : > { %v2653_v17 = vsel %vm1157_vm4, %v2644_v25, %v2646_v53  ;;  %v2654_v8 = vsel %vm1157_vm4, %v2646_v53, %v2648_v15  ;;  %v3133_v53 = vld [vmem:[%s5011_s10] sm:$0xff] }
 0x643   : > { %v2666_v6 = vadd.f32 %v2653_v17, %v4842_v21  ;;  %v2667_v61 = vadd.f32 %v2654_v8, %v4861_v56  ;;  %v2702_v56 = vsel %vm1348_vm8, %v2694_v48, %v4855_v18  ;;  %v2855_v8 = vpop.f32.mrf.mxu1 }
 0x644   : > { %v2716_v9 = vadd.f32 %v2702_v56, %v2668_v57 }
 0x649   : > { %v2692_v35 = vpop.permute.xlu1 %2691 }
 0x64a   : > { %v2700_v0 = vsel %vm1348_vm8, %v2690_v63, %v2692_v35  ;;  %v2701_v32 = vsel %vm1348_vm8, %v2692_v35, %v2694_v48  ;;  %v2842_v35 = vpop.f32.mrf.mxu0  ;;  %v2894_v63 = vpop.f32.mrf.mxu2 }
 0x64b   : > { %v2714_v50 = vadd.f32 %v2700_v0, %v2666_v6  ;;  %v2715_v3 = vadd.f32 %v2701_v32, %v2667_v61  ;;  %v2857_v14 = vpop.f32.mrf.mxu1  ;;  %v2909_v32 = vpop.f32.mrf.mxu3 }
 0x651   : > { %v2738_v1 = vpop.permute.xlu1 %2737 }
 0x652   : > { %v2747_v46 = vsel %vm1446_vm10, %v4876_v2, %v2738_v1  ;;  %v2748_v4 = vsel %vm1446_vm10, %v2738_v1, %v2740_v39  ;;  %v2742_v38 = vpop.permute.xlu0 %2741  ;;  %v2844_v28 = vpop.f32.mrf.mxu0 }
 0x653   : > { %v2761_v44 = vadd.f32 %v2747_v46, %v2713_v55  ;;  %v2762_v31 = vadd.f32 %v2748_v4, %v2714_v50  ;;  %v2749_v34 = vsel %vm1446_vm10, %v2740_v39, %v2742_v38  ;;  %v2896_v17 = vpop.f32.mrf.mxu2  ;;  %v2881_v55 = vpop.f32.mrf.mxu1 }
 0x654   : > { %v2763_v21 = vadd.f32 %v2749_v34, %v2715_v3  ;;  %v2962_v1 = vpop.f32.mrf.mxu3 }
 0x655   : > { %v2774_v54 = vadd.f32 %v4853_v43, %v2761_v44  ;;  %v2775_v13 = vadd.f32 %v4853_v43, %v2762_v31  ;;  %v2963_v46 = vadd.f32 %v2962_v1, %v2881_v55 }
 0x656   : > { %v2776_v29 = vadd.f32 %v4853_v43, %v2763_v21 }
 0x657   : > { %vm2782_vm4 = vcmp.ge.f32.partialorder %v2775_v13, 0.0  ;;  %v2788_v2 = vmul.f32 0.01, %v2774_v54  ;;  %v2789_v47 = vmul.f32 0.01, %v2775_v13  ;;  %vm2781_vm14 = vcmp.ge.f32.partialorder %v2774_v54, 0.0 }
 0x658   : > { %vm2783_vm15 = vcmp.ge.f32.partialorder %v2776_v29, 0.0  ;;  %v2790_v51 = vmul.f32 0.01, %v2776_v29 }
 0x659   : > { %v2796_v5 = vsel %vm2782_vm4, %v2775_v13, %v2789_v47  ;;  %v2744_v36 = vpop.permute.xlu1 %2743  ;;  %v2795_v30 = vsel %vm2781_vm14, %v2774_v54, %v2788_v2 }
 0x65a   : > { %v2797_v42 = vsel %vm2783_vm15, %v2776_v29, %v2790_v51  ;;  %v2750_v27 = vsel %vm1446_vm10, %v2742_v38, %v2744_v36  ;;  %v3011_v49 = vpop.permute.xlu0 %3010  ;;  %v2810_v18 = vmul.f32 %v4857_v45, %v2796_v5  ;;  %v2809_v20 = vmul.f32 %v4857_v45, %v2795_v30  ;;  %v2868_v0 = vpop.f32.mrf.mxu0 }
 0x65b   : > { %v2764_v11 = vadd.f32 %v2750_v27, %v2716_v9  ;;  %v3022_v16 = vsel %vm1627_vm0, %v3009_v7, %v3011_v49  ;;  %v2811_v12 = vmul.f32 %v4857_v45, %v2797_v42  ;;  %v2949_v6 = vpop.f32.mrf.mxu2  ;;  %v2883_v38 = vpop.f32.mrf.mxu1 }
 0x65c   : > { %v3032_v59 = vsel %vm802_vm1, %v3022_v16, 0  ;;  %v2824_v62 = vadd.f32 %v4859_v52, %v2810_v18  ;;  %v2823_v22 = vadd.f32 %v4859_v52, %v2809_v20  ;;  %v4966_v39 = vadd.f32 %v2949_v6, %v2868_v0  ;;  %v2964_v44 = vpop.f32.mrf.mxu3 }
 0x65d   : > { %v2777_v37 = vadd.f32 %v4853_v43, %v2764_v11  ;;  %3056 = vmatpush.bf16.msrb.mxu2 %v3032_v59  ;;  %v2825_v19 = vadd.f32 %v4859_v52, %v2811_v12 }
 0x65e   : > { %v2998_v23 = vpack.c.bf16 %v2824_v62, %v2824_v62  ;;  %v2997_v48 = vpack.c.bf16 %v2823_v22, %v2823_v22 }
 0x65f   : > { %vm2784_vm8 = vcmp.ge.f32.partialorder %v2777_v37, 0.0  ;;  %v2791_v24 = vmul.f32 0.01, %v2777_v37  ;;  %v2999_v41 = vpack.c.bf16 %v2825_v19, %v2825_v19 }
 0x660   : > { %3472 = vmatmul.msk.bf16.vlgmr.msrb.gmra.mxu2 %vm786_vm2, %v4940_v40  ;;  %3016 = vrot.lane.b32.xlu2 %v2998_v23, %s3550_s19 }
 0x661   : > { %v2798_v43 = vsel %vm2784_vm8, %v2777_v37, %v2791_v24  ;;  %3018 = vrot.lane.b32.xlu0 %v2999_v41, %s3550_s19  ;;  %v3013_v60 = vpop.permute.xlu1 %3012 }
 0x662   : > { %v3023_v10 = vsel %vm1627_vm0, %v3011_v49, %v3013_v60  ;;  %v2812_v58 = vmul.f32 %v4857_v45, %v2798_v43  ;;  %v3478_v45 = vld [vmem:[%s5011_s10 + $0x8] sm:$0xff]  ;;  %v2870_v61 = vpop.f32.mrf.mxu0 }
 0x663   : > { %v3035_v26 = vsel %vm802_vm1, %v3023_v10, 0  ;;  %v2951_v50 = vpop.f32.mrf.mxu2  ;;  %v2936_v29 = vpop.f32.mrf.mxu1 }
 0x664   : > { %3069 = vmatpush.bf16.msrb.mxu3 %v3035_v26  ;;  %v2826_v15 = vadd.f32 %v4859_v52, %v2812_v58  ;;  %v3479_v52 = vld [vmem:[%s5011_s10 + $0x10] sm:$0xff]  ;;  %v2937_v37 = vadd.f32 %v2936_v29, %v2855_v8 }
 0x666   : > { %v3000_v25 = vpack.c.bf16 %v2826_v15, %v2826_v15 }
 0x667   : > { %3473 = vmatmul.msk.bf16.vlgmr.msrb.gmra.mxu3 %vm786_vm2, %v4940_v40 }
 0x668   : > { %3020 = vrot.lane.b32.xlu1 %v3000_v25, %s3550_s19  ;;  %3014 = vrot.lane.b32.xlu2 %v2997_v48, %s3550_s19 }
 0x669   : > { %3136 = vperm.xlu0 %3529, %v3133_v53  }
 0x66a   : > { %v2923_v4 = vpop.f32.mrf.mxu0 }
 0x66b   : > { %v2938_v57 = vpop.f32.mrf.mxu1  ;;  %v2924_v30 = vadd.f32 %v2923_v4, %v2842_v35 }
 0x670   : > { %3167 = vperm.xlu1 %3530, %v3478_v45   ;;  %3180 = vperm.xlu2 %3531, %v3479_v52  }
 0x672   : > { %v2925_v56 = vpop.f32.mrf.mxu0 }
 0x673   : > { %v2988_v7 = vpop.f32.mrf.mxu1 }
 0x674   : > { %v2989_v27 = vadd.f32 %v2988_v7, %v2907_v33 }
 0x67a   : > { %v2975_v9 = vpop.f32.mrf.mxu0 }
 0x67b   : > { %v2976_v5 = vadd.f32 %v2975_v9, %v2894_v63  ;;  %v2990_v11 = vpop.f32.mrf.mxu1 }
 0x682   : > { %v2977_v18 = vpop.f32.mrf.mxu0 }
 0x6ba   : > { %v3017_v3 = vpop.permute.xlu2 %3016 }
 0x6c2   : > { %v3015_v31 = vpop.permute.xlu2 %3014 }
 0x6c3   : > { %v3024_v34 = vsel %vm1627_vm0, %v3013_v60, %v3015_v31  ;;  %v3025_v21 = vsel %vm1627_vm0, %v3015_v31, %v3017_v3 }
 0x6c4   : > { %v3038_v54 = vsel %vm802_vm1, %v3024_v34, 0  ;;  %v3041_v13 = vsel %vm802_vm1, %v3025_v21, 0 }
 0x6c5   : > { %3082 = vmatpush.bf16.msrb.mxu0 %v3038_v54  ;;  %3095 = vmatpush.bf16.msrb.mxu1 %v3041_v13 }
 0x6c8   : > { %3474 = vmatmul.msk.bf16.vlgmr.msrb.gmra.mxu0 %vm786_vm2, %v4940_v40  ;;  %3475 = vmatmul.msk.bf16.vlgmr.msrb.gmra.mxu1 %vm786_vm2, %v4940_v40 }
 0x6ca   : > { %v3181_v10 = vpop.permute.xlu2 %3180 }
 0x6d3   : > { %v3019_v2 = vpop.permute.xlu0 %3018 }
 0x6d4   : > { %v3026_v47 = vsel %vm1627_vm0, %v3017_v3, %v3019_v2 }
 0x6d5   : > { %v3044_v51 = vsel %vm802_vm1, %v3026_v47, 0 }
 0x6d6   : > { %3108 = vmatpush.bf16.msra.mxu2 %v3044_v51 }
 0x6d9   : > { %3476 = vmatmul.msk.bf16.vlgmr.msra.gmra.mxu2 %vm786_vm2, %v4940_v40 }
 0x6da   : > { %v3021_v36 = vpop.permute.xlu1 %3020 }
 0x6db   : > { %v3027_v42 = vsel %vm1627_vm0, %v3019_v2, %v3021_v36  ;;  %v3137_v59 = vpop.permute.xlu0 %3136 }
 0x6dc   : > { %v3047_v49 = vsel %vm802_vm1, %v3027_v42, 0 }
 0x6dd   : > { %3121 = vmatpush.bf16.msra.mxu3 %v3047_v49 }
 0x6e0   : > { %3477 = vmatmul.msk.bf16.vlgmr.msra.gmra.mxu3 %vm786_vm2, %v4940_v40 }
 0x6e2   : > { %v3168_v23 = vpop.permute.xlu1 %3167 }
 0x6e3   : > { %v3058_v16 = vpop.f32.mrf.mxu2 }
 0x6e4   : > { %v3127_v12 = vadd.f32 %v3058_v16, %v2924_v30 }
 0x6e6   : > { %v3139_v62 = vadd.f32 %v3137_v59, %v3127_v12 }
 0x6e8   : > { %vm3145_vm10 = vcmp.ge.f32.partialorder %v3139_v62, 0.0  ;;  %v3151_v19 = vmul.f32 0.01, %v3139_v62 }
 0x6ea   : > { %v3157_v20 = vsel %vm3145_vm10, %v3139_v62, %v3151_v19  ;;  %v3071_v24 = vpop.f32.mrf.mxu3 }
 0x6eb   : > { %v3170_v41 = vmul.f32 %v3168_v23, %v3157_v20  ;;  %v3128_v43 = vadd.f32 %v3071_v24, %v2937_v37  ;;  %v3060_v60 = vpop.f32.mrf.mxu2 }
 0x6ed   : > { %v3183_v40 = vadd.f32 %v3181_v10, %v3170_v41  ;;  %v3140_v58 = vadd.f32 %v3137_v59, %v3128_v43 }
 0x6ef   : > { %3189 = vst [vmem:[%s4989_s15] sm:$0xff] %v3183_v40  ;;  %vm3146_vm1 = vcmp.ge.f32.partialorder %v3140_v58, 0.0  ;;  %v3152_v22 = vmul.f32 0.01, %v3140_v58 }
 0x6f1   : > { %v3158_v26 = vsel %vm3146_vm1, %v3140_v58, %v3152_v22 }
 0x6f2   : > { %v3171_v15 = vmul.f32 %v3168_v23, %v3158_v26  ;;  %v3073_v25 = vpop.f32.mrf.mxu3 }
 0x6f4   : > { %v3184_v53 = vadd.f32 %v3181_v10, %v3171_v15 }
 0x6f6   : > { %3190 = vst [vmem:[%s4989_s15 + $0x8] sm:$0xff] %v3184_v53 }
 0x745   : > { %v3084_v48 = vpop.f32.mrf.mxu0  ;;  %v3097_v45 = vpop.f32.mrf.mxu1 }
 0x746   : > { %v3129_v52 = vadd.f32 %v3084_v48, %v4966_v39  ;;  %v3130_v35 = vadd.f32 %v3097_v45, %v2963_v46 }
 0x748   : > { %v3141_v63 = vadd.f32 %v3137_v59, %v3129_v52  ;;  %v3142_v28 = vadd.f32 %v3137_v59, %v3130_v35 }
 0x74a   : > { %vm3147_vm2 = vcmp.ge.f32.partialorder %v3141_v63, 0.0  ;;  %v3153_v17 = vmul.f32 0.01, %v3141_v63  ;;  %vm3148_vm0 = vcmp.ge.f32.partialorder %v3142_v28, 0.0  ;;  %v3154_v8 = vmul.f32 0.01, %v3142_v28 }
 0x74c   : > { %v3159_v33 = vsel %vm3147_vm2, %v3141_v63, %v3153_v17  ;;  %v3160_v0 = vsel %vm3148_vm0, %v3142_v28, %v3154_v8 }
 0x74d   : > { %v3172_v14 = vmul.f32 %v3168_v23, %v3159_v33  ;;  %v3173_v6 = vmul.f32 %v3168_v23, %v3160_v0  ;;  %v3086_v32 = vpop.f32.mrf.mxu0  ;;  %v3099_v61 = vpop.f32.mrf.mxu1 }
 0x74f   : > { %v3185_v55 = vadd.f32 %v3181_v10, %v3172_v14  ;;  %v3186_v50 = vadd.f32 %v3181_v10, %v3173_v6 }
 0x751   : > { %3191 = vst [vmem:[%s4989_s15 + $0x10] sm:$0xff] %v3185_v55 }
 0x752   : > { %3192 = vst [vmem:[%s4989_s15 + $0x18] sm:$0xff] %v3186_v50 }
 0x75c   : > { %v3110_v39 = vpop.f32.mrf.mxu2 }
 0x75d   : > { %v3131_v1 = vadd.f32 %v3110_v39, %v2976_v5 }
 0x75f   : > { %v3143_v3 = vadd.f32 %v3137_v59, %v3131_v1 }
 0x761   : > { %vm3149_vm3 = vcmp.ge.f32.partialorder %v3143_v3, 0.0  ;;  %v3155_v46 = vmul.f32 0.01, %v3143_v3 }
 0x763   : > { %v3161_v4 = vsel %vm3149_vm3, %v3143_v3, %v3155_v46  ;;  %v3123_v38 = vpop.f32.mrf.mxu3 }
 0x764   : > { %v3174_v44 = vmul.f32 %v3168_v23, %v3161_v4  ;;  %v3132_v31 = vadd.f32 %v3123_v38, %v2989_v27  ;;  %v3112_v34 = vpop.f32.mrf.mxu2 }
 0x766   : > { %v3187_v21 = vadd.f32 %v3181_v10, %v3174_v44  ;;  %v3144_v54 = vadd.f32 %v3137_v59, %v3132_v31 }
 0x768   : > { %3193 = vst [vmem:[%s4989_s15 + $0x20] sm:$0xff] %v3187_v21  ;;  %vm3150_vm5 = vcmp.ge.f32.partialorder %v3144_v54, 0.0  ;;  %v3156_v13 = vmul.f32 0.01, %v3144_v54 }
 0x76a   : > { %v3162_v56 = vsel %vm3150_vm5, %v3144_v54, %v3156_v13 }
 0x76b   : > { %v3175_v29 = vmul.f32 %v3168_v23, %v3162_v56  ;;  %v3125_v57 = vpop.f32.mrf.mxu3 }
 0x76d   : > { %v3188_v2 = vadd.f32 %v3181_v10, %v3175_v29 }
 0x76f   : > { %3194 = vst [vmem:[%s4989_s15 + $0x28] sm:$0xff] %v3188_v2 }
 0x770 PF: > { %s22_s21 = sadd.s32 1, %s3538_s21  }
 0x771   : > { %p19_p4 = scmp.ge.s32.totalorder %s22_s21, 4  }
 0x773   :  { %21 = sbr.rel (!%p19_p4) target bundleno = 1 (0x1), region = 111 }

</bundles_post_ra>
